<compile_context>
chip_gen: v7x
topology: tpu7x:2x2x1
jax: 0.10.0
libtpu: 0.0.40
codegen_flags: <defaults>
</compile_context>

<pallas_src>
import functools

import jax
import jax.numpy as jnp
from jax.experimental import pallas as pl
from jax.experimental.pallas import tpu as pltpu


def _round_up(x, m):
    return (x + m - 1) // m * m


def _choose_tn(n):
    """Lane-dense padded N and an evenly dividing tile."""
    np_ = _round_up(n, 128)
    tn = 256 if np_ % 256 == 0 else 128
    return np_, tn


def _vmem_limit(block_bytes):
    # Budget derived from the actual block footprint, clamped so it never
    # exceeds v7x's 64 MiB physical VMEM (v5e/v6e have 128 MiB).
    return int(min(64 * 2 ** 20, max(32 * 2 ** 20, 2 * block_bytes)))


# ----------------------------------------------------------------------------
# Kernel 1: "tap" convolution.  One batch element per grid step along axis 0;
# output channels tiled along axis 1.  Each tap is a contiguous, statically
# offset row-window of the flattened activation slab; the K (= effective
# input channels) contraction is a single full-dim block, so there is no
# accumulator scratch and no k grid axis.
# ----------------------------------------------------------------------------
def _tap_conv_kernel(x_ref, w_ref, b_ref, o_ref, *, tap_offsets, m_out,
                     apply_leaky, negative_slope):
    # x_ref: (L_pad, Cin)   flattened spatial slab of one batch element (bf16)
    # w_ref: (T, Cin, TN)   per-tap weight matrices (bf16)
    # b_ref: (1, TN)        f32 bias row
    # o_ref: (m_out, TN)
    acc = None
    for t, off in enumerate(tap_offsets):
        tap = x_ref[pl.ds(off, m_out), :]
        contrib = jnp.dot(tap, w_ref[t], preferred_element_type=jnp.float32)
        acc = contrib if acc is None else acc + contrib
    out = acc + b_ref[...]
    if apply_leaky:
        out = jnp.where(out >= 0, out, negative_slope * out)
    o_ref[...] = out.astype(o_ref.dtype)


def _tap_conv_call(slab, w2, bias_row, tap_offsets, m_out, out_dtype,
                   apply_leaky, negative_slope=0.01):
    """slab: (B, L, Cin), w2: (T, Cin, N), bias_row: (1, N) -> (B, m_out, Np)."""
    B, L, Cin = slab.shape
    T, Cin2, N = w2.shape
    assert Cin == Cin2 and T == len(tap_offsets)

    # The furthest tap window must stay inside the slab (padded rows are zero
    # and only ever feed the garbage output columns that get sliced off).
    L_pad = max(L, m_out + max(tap_offsets))

    slab = slab.astype(jnp.bfloat16)
    if L_pad > L:
        slab = jnp.pad(slab, ((0, 0), (0, L_pad - L), (0, 0)))

    Np, TN = _choose_tn(N)
    w2 = w2.astype(jnp.bfloat16)
    bias_row = bias_row.astype(jnp.float32)
    if Np > N:
        w2 = jnp.pad(w2, ((0, 0), (0, 0), (0, Np - N)))
        bias_row = jnp.pad(bias_row, ((0, 0), (0, Np - N)))

    grid = (B, Np // TN)

    kernel = functools.partial(
        _tap_conv_kernel, tap_offsets=tuple(int(o) for o in tap_offsets),
        m_out=int(m_out), apply_leaky=apply_leaky,
        negative_slope=negative_slope)

    out_bytes = jnp.dtype(out_dtype).itemsize
    block_bytes = 2 * (L_pad * Cin * 2 + T * Cin * TN * 2 + TN * 4
                       + m_out * TN * out_bytes)
    flops = int(2 * B * m_out * Cin * Np * T)
    bytes_accessed = int(B * L_pad * Cin * 2 + T * Cin * Np * 2 + Np * 4
                         + B * m_out * Np * out_bytes)

    return pl.pallas_call(
        kernel,
        out_shape=jax.ShapeDtypeStruct((B, m_out, Np), out_dtype),
        grid=grid,
        in_specs=[
            pl.BlockSpec((None, L_pad, Cin), lambda b, j: (b, 0, 0)),
            pl.BlockSpec((T, Cin, TN), lambda b, j: (0, 0, j)),
            pl.BlockSpec((1, TN), lambda b, j: (0, j)),
        ],
        out_specs=pl.BlockSpec((None, m_out, TN), lambda b, j: (b, 0, j)),
        compiler_params=pltpu.CompilerParams(
            dimension_semantics=("parallel", "parallel"),
            vmem_limit_bytes=_vmem_limit(block_bytes),
            allow_input_fusion=[True, True, True],
        ),
        cost_estimate=pl.CostEstimate(flops=flops, transcendentals=0,
                                      bytes_accessed=bytes_accessed),
    )(slab, w2, bias_row)


# ----------------------------------------------------------------------------
# Kernel 2: small dense GEMM (used for conv_cls, which spans the full spatial
# extent and is therefore a plain linear layer).  Single K step, no scratch.
# ----------------------------------------------------------------------------
def _dense_kernel(a_ref, b_ref, bias_ref, o_ref, *, apply_leaky, negative_slope):
    out = jnp.dot(a_ref[...], b_ref[...], preferred_element_type=jnp.float32)
    out = out + bias_ref[...]
    if apply_leaky:
        out = jnp.where(out >= 0, out, negative_slope * out)
    o_ref[...] = out.astype(o_ref.dtype)


def dense_pallas(a, b, *, out_dtype=jnp.float32, apply_leaky=False,
                 negative_slope=0.01):
    """(M, K) @ (K, N) + optional LeakyReLU, bf16 operands / f32 accumulation."""
    M, K = a.shape
    K2, N = b.shape
    assert K == K2
    TM = min(512, _round_up(M, 16))
    Mp = _round_up(M, TM)
    Np, TN = _choose_tn(N)

    a_p = jnp.pad(a.astype(jnp.bfloat16), ((0, Mp - M), (0, 0)))
    b_p = jnp.pad(b.astype(jnp.bfloat16), ((0, 0), (0, Np - N)))
    bias_row = jnp.zeros((1, Np), jnp.float32)

    block_bytes = 2 * (TM * K * 2 + K * TN * 2 + TN * 4 + TM * TN * 4)

    out = pl.pallas_call(
        functools.partial(_dense_kernel, apply_leaky=apply_leaky,
                          negative_slope=negative_slope),
        out_shape=jax.ShapeDtypeStruct((Mp, Np), out_dtype),
        grid=(Mp // TM, Np // TN),
        in_specs=[
            pl.BlockSpec((TM, K), lambda i, j: (i, 0)),
            pl.BlockSpec((K, TN), lambda i, j: (0, j)),
            pl.BlockSpec((1, TN), lambda i, j: (0, j)),
        ],
        out_specs=pl.BlockSpec((TM, TN), lambda i, j: (i, j)),
        compiler_params=pltpu.CompilerParams(
            dimension_semantics=("parallel", "parallel"),
            vmem_limit_bytes=_vmem_limit(block_bytes),
            allow_input_fusion=[True, True, True],
        ),
    )(a_p, b_p, bias_row)
    return out[:M, :N]


# ----------------------------------------------------------------------------
# Conv2d wrappers (NHWC).
# ----------------------------------------------------------------------------
def conv4x4_s2_pallas(x, weight, bias, *, out_dtype, apply_leaky=True,
                      negative_slope=0.01):
    """nn.Conv2d(kernel=4, stride=2, padding=1) (+ LeakyReLU) on NHWC input."""
    B, H, W, C = x.shape
    assert H % 2 == 0 and W % 2 == 0
    out_c = weight.shape[0]
    OH, OW = H // 2, W // 2

    # pad by 1 + space-to-depth(2): the 4x4/stride-2 conv becomes a 2x2
    # stride-1 "valid" conv with 4*C effective input channels.
    x_p = jnp.pad(x, ((0, 0), (1, 1), (1, 1), (0, 0)))
    x_s = x_p.reshape(B, OH + 1, 2, OW + 1, 2, C)
    x_s = jnp.transpose(x_s, (0, 1, 3, 2, 4, 5))          # (B, i, j, di, dj, C)
    slab = x_s.reshape(B, (OH + 1) * (OW + 1), 4 * C)

    # weight (O, C, 4, 4) -> (tap=(a,b), (di,dj,c), O)
    w = jnp.transpose(weight, (2, 3, 1, 0))               # (kh, kw, C, O)
    w = w.reshape(2, 2, 2, 2, C, out_c)                   # (a, di, b, dj, C, O)
    w = jnp.transpose(w, (0, 2, 1, 3, 4, 5))              # (a, b, di, dj, C, O)
    w2 = w.reshape(4, 4 * C, out_c)

    bias_row = (jnp.zeros((1, out_c), jnp.float32) if bias is None
                else bias.reshape(1, out_c).astype(jnp.float32))

    tap_offsets = [a * (OW + 1) + b for a in range(2) for b in range(2)]
    m_out = OH * (OW + 1)                                  # last column = garbage
    out = _tap_conv_call(slab, w2, bias_row, tap_offsets, m_out, out_dtype,
                         apply_leaky, negative_slope)
    out = out.reshape(B, OH, OW + 1, -1)[:, :, :OW, :out_c]
    return out


def conv_s1_pallas(x, weight, bias, *, padding, out_dtype, apply_leaky=False,
                   negative_slope=0.01):
    """nn.Conv2d(kernel=k, stride=1, padding=padding) on NHWC input."""
    B, H, W, C = x.shape
    out_c, _, kh, kw = weight.shape
    OH = H + 2 * padding - kh + 1
    OW = W + 2 * padding - kw + 1
    Hs, Ws = H + 2 * padding, W + 2 * padding

    x_p = jnp.pad(x, ((0, 0), (padding, padding), (padding, padding), (0, 0)))
    slab = x_p.reshape(B, Hs * Ws, C)

    w2 = jnp.transpose(weight, (2, 3, 1, 0)).reshape(kh * kw, C, out_c)
    bias_row = (jnp.zeros((1, out_c), jnp.float32) if bias is None
                else bias.reshape(1, out_c).astype(jnp.float32))

    tap_offsets = [i * Ws + j for i in range(kh) for j in range(kw)]
    m_out = OH * Ws                                        # extra columns = garbage
    out = _tap_conv_call(slab, w2, bias_row, tap_offsets, m_out, out_dtype,
                         apply_leaky, negative_slope)
    out = out.reshape(B, OH, Ws, -1)[:, :, :OW, :out_c]
    return out


# ----------------------------------------------------------------------------
# Discriminator parameters + forward
# ----------------------------------------------------------------------------
def init_discriminator_params(key, image_size, conv_dim, layer_num, class_num):
    params = {"body": []}

    def conv_init(key, out_c, in_c, k, with_bias):
        kw_, kb_ = jax.random.split(key)
        fan_in = in_c * k * k
        bound = 1.0 / jnp.sqrt(fan_in)
        w = jax.random.uniform(kw_, (out_c, in_c, k, k), jnp.float32,
                               minval=-bound, maxval=bound)
        b = (jax.random.uniform(kb_, (out_c,), jnp.float32,
                                minval=-bound, maxval=bound)
             if with_bias else None)
        return w, b

    keys = jax.random.split(key, layer_num + 2)
    w, b = conv_init(keys[0], conv_dim, 3, 4, with_bias=True)
    params["body"].append((w, b))
    current_dim = conv_dim
    for i in range(1, layer_num):
        w, b = conv_init(keys[i], current_dim * 2, current_dim, 4, with_bias=True)
        params["body"].append((w, b))
        current_dim *= 2
    cls_kernel = image_size // (2 ** layer_num)
    params["conv_src"], _ = conv_init(keys[layer_num], 1, current_dim, 3,
                                      with_bias=False)
    params["conv_cls"], _ = conv_init(keys[layer_num + 1], class_num,
                                      current_dim, cls_kernel, with_bias=False)
    params["cls_kernel"] = cls_kernel
    return params


def discriminator_forward(params, x_nchw):
    """x_nchw: (B, 3, H, W) f32 -> (out_src NCHW, out_cls (B, class_num))."""
    x = jnp.transpose(x_nchw, (0, 2, 3, 1)).astype(jnp.bfloat16)   # NHWC bf16

    # body: 4x4 / stride-2 / pad-1 convs, each followed by LeakyReLU(0.01)
    for (w, b) in params["body"]:
        x = conv4x4_s2_pallas(x, w, b, out_dtype=jnp.bfloat16,
                              apply_leaky=True, negative_slope=0.01)

    # conv_src: 3x3, stride 1, pad 1, no bias, no activation
    out_src = conv_s1_pallas(x, params["conv_src"], None, padding=1,
                             out_dtype=jnp.float32, apply_leaky=False)
    out_src = jnp.transpose(out_src, (0, 3, 1, 2))                 # NCHW

    # conv_cls: kernel covers the full remaining spatial extent -> one GEMM
    B, h, w_sp, c = x.shape
    k = params["cls_kernel"]
    assert h == k and w_sp == k
    a = x.reshape(B, h * w_sp * c)                                 # (h, w, c) order
    w_cls = params["conv_cls"]                                     # (O, C, k, k)
    w_mat = jnp.transpose(w_cls, (2, 3, 1, 0)).reshape(k * k * c, -1)
    out_cls = dense_pallas(a, w_mat, out_dtype=jnp.float32, apply_leaky=False)
    return out_src, out_cls


# ----------------------------------------------------------------------------
# Pure-XLA f32 reference (for the numerical check)
# ----------------------------------------------------------------------------
def _ref_conv(x, w, b, stride, padding):
    out = jax.lax.conv_general_dilated(
        x, jnp.transpose(w, (2, 3, 1, 0)),
        window_strides=(stride, stride),
        padding=((padding, padding), (padding, padding)),
        dimension_numbers=("NHWC", "HWIO", "NHWC"))
    if b is not None:
        out = out + b
    return out


def reference_forward(params, x_nchw):
    x = jnp.transpose(x_nchw, (0, 2, 3, 1)).astype(jnp.float32)
    for (w, b) in params["body"]:
        x = _ref_conv(x, w, b, 2, 1)
        x = jnp.where(x >= 0, x, 0.01 * x)
    out_src = jnp.transpose(_ref_conv(x, params["conv_src"], None, 1, 1),
                            (0, 3, 1, 2))
    out_cls = _ref_conv(x, params["conv_cls"], None, 1, 0)
    out_cls = out_cls.reshape(out_cls.shape[0], -1)
    return out_src, out_cls


if __name__ == "__main__":
    image_size, conv_dim, layer_num, class_num = 16, 8, 2, 5
    batch = 2

    key = jax.random.PRNGKey(0)
    k_param, k_x = jax.random.split(key)

    params = init_discriminator_params(k_param, image_size, conv_dim,
                                       layer_num, class_num)
    x = jax.random.normal(k_x, (batch, 3, image_size, image_size), jnp.float32)

    fwd = jax.jit(lambda inp: discriminator_forward(params, inp))
    out_src, out_cls = fwd(x)
    jax.block_until_ready((out_src, out_cls))

    expected_hw = image_size // (2 ** layer_num)
    assert out_src.shape == (batch, 1, expected_hw, expected_hw), out_src.shape
    assert out_cls.shape == (batch, class_num), out_cls.shape
    assert bool(jnp.all(jnp.isfinite(out_src))) and bool(jnp.all(jnp.isfinite(out_cls)))

    # Numerical check vs. f32 XLA convolution (bf16 operands / f32 accumulation
    # in the Pallas path -> a few-percent agreement is expected).
    ref_src, ref_cls = reference_forward(params, x)
    scale_src = float(jnp.max(jnp.abs(ref_src))) + 1e-6
    scale_cls = float(jnp.max(jnp.abs(ref_cls))) + 1e-6
    err_src = float(jnp.max(jnp.abs(out_src.astype(jnp.float32) - ref_src)))
    err_cls = float(jnp.max(jnp.abs(out_cls.astype(jnp.float32) - ref_cls)))
    assert err_src <= 0.08 * scale_src + 0.01, ("out_src mismatch", err_src, scale_src)
    assert err_cls <= 0.08 * scale_cls + 0.01, ("out_cls mismatch", err_cls, scale_cls)

    print("KERNEL_OK")
</pallas_src>

<mosaic_0001>
module attributes {stable_mosaic.version = 11 : i64} {
  func.func @_tap_conv_kernel(%arg0: i32, %arg1: i32, %arg2: memref<1x82x12xbf16, #tpu.memory_space<vmem>>, %arg3: memref<4x12x128xbf16, #tpu.memory_space<vmem>>, %arg4: memref<1x128xf32, #tpu.memory_space<vmem>>, %arg5: memref<1x72x128xbf16, #tpu.memory_space<vmem>>) attributes {dimension_semantics = [#tpu.dimension_semantics<parallel>, #tpu.dimension_semantics<parallel>], iteration_bounds = array<i64: 2, 1>, scalar_prefetch = 0 : i64, scratch_operands = 0 : i64, tpu.core_type = #tpu.core_type<tc>, window_params = [{transform_indices = @transform_0, window_bounds = array<i64: 1, 82, 12>}, {transform_indices = @transform_1, window_bounds = array<i64: 4, 12, 128>}, {transform_indices = @transform_2, window_bounds = array<i64: 1, 128>}, {transform_indices = @transform_3, window_bounds = array<i64: 1, 72, 128>}]} {
    %c0 = arith.constant 0 : index
    %c0_0 = arith.constant 0 : index
    %c0_1 = arith.constant 0 : index
    %0 = vector.load %arg2[%c0, %c0_0, %c0_1] : memref<1x82x12xbf16, #tpu.memory_space<vmem>>, vector<1x72x12xbf16>
    %1 = vector.shape_cast %0 : vector<1x72x12xbf16> to vector<72x12xbf16>
    %c0_2 = arith.constant 0 : index
    %c0_3 = arith.constant 0 : index
    %c0_4 = arith.constant 0 : index
    %2 = vector.load %arg3[%c0_2, %c0_3, %c0_4] : memref<4x12x128xbf16, #tpu.memory_space<vmem>>, vector<1x12x128xbf16>
    %3 = vector.shape_cast %2 : vector<1x12x128xbf16> to vector<12x128xbf16>
    %cst = arith.constant dense<0.000000e+00> : vector<72x128xf32>
    %4 = tpu.matmul %1, %3, %cst {dimension_numbers = #tpu.dot_dimension_numbers<[1], [0], [0], [1], [0, 0, 1, 1], [], []>} : vector<72x12xbf16>, vector<12x128xbf16>, vector<72x128xf32> -> vector<72x128xf32>
    %c0_5 = arith.constant 0 : index
    %c1 = arith.constant 1 : index
    %c0_6 = arith.constant 0 : index
    %5 = vector.load %arg2[%c0_5, %c1, %c0_6] : memref<1x82x12xbf16, #tpu.memory_space<vmem>>, vector<1x72x12xbf16>
    %6 = vector.shape_cast %5 : vector<1x72x12xbf16> to vector<72x12xbf16>
    %c1_7 = arith.constant 1 : index
    %c0_8 = arith.constant 0 : index
    %c0_9 = arith.constant 0 : index
    %7 = vector.load %arg3[%c1_7, %c0_8, %c0_9] : memref<4x12x128xbf16, #tpu.memory_space<vmem>>, vector<1x12x128xbf16>
    %8 = vector.shape_cast %7 : vector<1x12x128xbf16> to vector<12x128xbf16>
    %cst_10 = arith.constant dense<0.000000e+00> : vector<72x128xf32>
    %9 = tpu.matmul %6, %8, %cst_10 {dimension_numbers = #tpu.dot_dimension_numbers<[1], [0], [0], [1], [0, 0, 1, 1], [], []>} : vector<72x12xbf16>, vector<12x128xbf16>, vector<72x128xf32> -> vector<72x128xf32>
    %10 = arith.addf %4, %9 : vector<72x128xf32>
    %c0_11 = arith.constant 0 : index
    %c9 = arith.constant 9 : index
    %c0_12 = arith.constant 0 : index
    %11 = vector.load %arg2[%c0_11, %c9, %c0_12] : memref<1x82x12xbf16, #tpu.memory_space<vmem>>, vector<1x72x12xbf16>
    %12 = vector.shape_cast %11 : vector<1x72x12xbf16> to vector<72x12xbf16>
    %c2 = arith.constant 2 : index
    %c0_13 = arith.constant 0 : index
    %c0_14 = arith.constant 0 : index
    %13 = vector.load %arg3[%c2, %c0_13, %c0_14] : memref<4x12x128xbf16, #tpu.memory_space<vmem>>, vector<1x12x128xbf16>
    %14 = vector.shape_cast %13 : vector<1x12x128xbf16> to vector<12x128xbf16>
    %cst_15 = arith.constant dense<0.000000e+00> : vector<72x128xf32>
    %15 = tpu.matmul %12, %14, %cst_15 {dimension_numbers = #tpu.dot_dimension_numbers<[1], [0], [0], [1], [0, 0, 1, 1], [], []>} : vector<72x12xbf16>, vector<12x128xbf16>, vector<72x128xf32> -> vector<72x128xf32>
    %16 = arith.addf %10, %15 : vector<72x128xf32>
    %c0_16 = arith.constant 0 : index
    %c10 = arith.constant 10 : index
    %c0_17 = arith.constant 0 : index
    %17 = vector.load %arg2[%c0_16, %c10, %c0_17] : memref<1x82x12xbf16, #tpu.memory_space<vmem>>, vector<1x72x12xbf16>
    %18 = vector.shape_cast %17 : vector<1x72x12xbf16> to vector<72x12xbf16>
    %c3 = arith.constant 3 : index
    %c0_18 = arith.constant 0 : index
    %c0_19 = arith.constant 0 : index
    %19 = vector.load %arg3[%c3, %c0_18, %c0_19] : memref<4x12x128xbf16, #tpu.memory_space<vmem>>, vector<1x12x128xbf16>
    %20 = vector.shape_cast %19 : vector<1x12x128xbf16> to vector<12x128xbf16>
    %cst_20 = arith.constant dense<0.000000e+00> : vector<72x128xf32>
    %21 = tpu.matmul %18, %20, %cst_20 {dimension_numbers = #tpu.dot_dimension_numbers<[1], [0], [0], [1], [0, 0, 1, 1], [], []>} : vector<72x12xbf16>, vector<12x128xbf16>, vector<72x128xf32> -> vector<72x128xf32>
    %22 = arith.addf %16, %21 : vector<72x128xf32>
    %c0_21 = arith.constant 0 : index
    %c0_22 = arith.constant 0 : index
    %23 = vector.load %arg4[%c0_21, %c0_22] : memref<1x128xf32, #tpu.memory_space<vmem>>, vector<1x128xf32>
    %24 = vector.broadcast %23 : vector<1x128xf32> to vector<72x128xf32>
    %25 = arith.addf %22, %24 : vector<72x128xf32>
    %cst_23 = arith.constant 0.000000e+00 : f32
    %26 = vector.broadcast %cst_23 : f32 to vector<72x128xf32>
    %27 = arith.cmpf oge, %25, %26 : vector<72x128xf32>
    %cst_24 = arith.constant 0.00999999977 : f32
    %28 = vector.broadcast %cst_24 : f32 to vector<72x128xf32>
    %29 = arith.mulf %28, %25 : vector<72x128xf32>
    %30 = arith.select %27, %25, %29 : vector<72x128xi1>, vector<72x128xf32>
    %31 = arith.truncf %30 : vector<72x128xf32> to vector<72x128xbf16>
    %c0_25 = arith.constant 0 : index
    %c0_26 = arith.constant 0 : index
    %c0_27 = arith.constant 0 : index
    %32 = vector.load %arg5[%c0_25, %c0_26, %c0_27] : memref<1x72x128xbf16, #tpu.memory_space<vmem>>, vector<1x72x128xbf16>
    %33 = vector.shape_cast %32 : vector<1x72x128xbf16> to vector<72x128xbf16>
    %34 = vector.shape_cast %31 : vector<72x128xbf16> to vector<1x72x128xbf16>
    tpu.vector_store %arg5[%c0_25, %c0_26, %c0_27], %34 {strides = array<i32>} : memref<1x72x128xbf16, #tpu.memory_space<vmem>>, vector<1x72x128xbf16>,
    return
  }
  func.func @transform_0(%arg0: i32, %arg1: i32) -> (i32, i32, i32) {
    %c0_i32 = arith.constant 0 : i32
    %c0_i32_0 = arith.constant 0 : i32
    %c0_i32_1 = arith.constant 0 : i32
    return %arg0, %c0_i32, %c0_i32_0 : i32, i32, i32
  }
  func.func @transform_1(%arg0: i32, %arg1: i32) -> (i32, i32, i32) {
    %c0_i32 = arith.constant 0 : i32
    %c0_i32_0 = arith.constant 0 : i32
    %c0_i32_1 = arith.constant 0 : i32
    return %c0_i32, %c0_i32_0, %arg1 : i32, i32, i32
  }
  func.func @transform_2(%arg0: i32, %arg1: i32) -> (i32, i32) {
    %c0_i32 = arith.constant 0 : i32
    %c0_i32_0 = arith.constant 0 : i32
    return %c0_i32, %arg1 : i32, i32
  }
  func.func @transform_3(%arg0: i32, %arg1: i32) -> (i32, i32, i32) {
    %c0_i32 = arith.constant 0 : i32
    %c0_i32_0 = arith.constant 0 : i32
    return %arg0, %c0_i32, %arg1 : i32, i32, i32
  }
}

module attributes {stable_mosaic.version = 11 : i64} {
  func.func @_tap_conv_kernel(%arg0: i32, %arg1: i32, %arg2: memref<1x26x32xbf16, #tpu.memory_space<vmem>>, %arg3: memref<4x32x128xbf16, #tpu.memory_space<vmem>>, %arg4: memref<1x128xf32, #tpu.memory_space<vmem>>, %arg5: memref<1x20x128xbf16, #tpu.memory_space<vmem>>) attributes {dimension_semantics = [#tpu.dimension_semantics<parallel>, #tpu.dimension_semantics<parallel>], iteration_bounds = array<i64: 2, 1>, scalar_prefetch = 0 : i64, scratch_operands = 0 : i64, tpu.core_type = #tpu.core_type<tc>, window_params = [{transform_indices = @transform_0, window_bounds = array<i64: 1, 26, 32>}, {transform_indices = @transform_1, window_bounds = array<i64: 4, 32, 128>}, {transform_indices = @transform_2, window_bounds = array<i64: 1, 128>}, {transform_indices = @transform_3, window_bounds = array<i64: 1, 20, 128>}]} {
    %c0 = arith.constant 0 : index
    %c0_0 = arith.constant 0 : index
    %c0_1 = arith.constant 0 : index
    %0 = vector.load %arg2[%c0, %c0_0, %c0_1] : memref<1x26x32xbf16, #tpu.memory_space<vmem>>, vector<1x20x32xbf16>
    %1 = vector.shape_cast %0 : vector<1x20x32xbf16> to vector<20x32xbf16>
    %c0_2 = arith.constant 0 : index
    %c0_3 = arith.constant 0 : index
    %c0_4 = arith.constant 0 : index
    %2 = vector.load %arg3[%c0_2, %c0_3, %c0_4] : memref<4x32x128xbf16, #tpu.memory_space<vmem>>, vector<1x32x128xbf16>
    %3 = vector.shape_cast %2 : vector<1x32x128xbf16> to vector<32x128xbf16>
    %cst = arith.constant dense<0.000000e+00> : vector<20x128xf32>
    %4 = tpu.matmul %1, %3, %cst {dimension_numbers = #tpu.dot_dimension_numbers<[1], [0], [0], [1], [0, 0, 1, 1], [], []>} : vector<20x32xbf16>, vector<32x128xbf16>, vector<20x128xf32> -> vector<20x128xf32>
    %c0_5 = arith.constant 0 : index
    %c1 = arith.constant 1 : index
    %c0_6 = arith.constant 0 : index
    %5 = vector.load %arg2[%c0_5, %c1, %c0_6] : memref<1x26x32xbf16, #tpu.memory_space<vmem>>, vector<1x20x32xbf16>
    %6 = vector.shape_cast %5 : vector<1x20x32xbf16> to vector<20x32xbf16>
    %c1_7 = arith.constant 1 : index
    %c0_8 = arith.constant 0 : index
    %c0_9 = arith.constant 0 : index
    %7 = vector.load %arg3[%c1_7, %c0_8, %c0_9] : memref<4x32x128xbf16, #tpu.memory_space<vmem>>, vector<1x32x128xbf16>
    %8 = vector.shape_cast %7 : vector<1x32x128xbf16> to vector<32x128xbf16>
    %cst_10 = arith.constant dense<0.000000e+00> : vector<20x128xf32>
    %9 = tpu.matmul %6, %8, %cst_10 {dimension_numbers = #tpu.dot_dimension_numbers<[1], [0], [0], [1], [0, 0, 1, 1], [], []>} : vector<20x32xbf16>, vector<32x128xbf16>, vector<20x128xf32> -> vector<20x128xf32>
    %10 = arith.addf %4, %9 : vector<20x128xf32>
    %c0_11 = arith.constant 0 : index
    %c5 = arith.constant 5 : index
    %c0_12 = arith.constant 0 : index
    %11 = vector.load %arg2[%c0_11, %c5, %c0_12] : memref<1x26x32xbf16, #tpu.memory_space<vmem>>, vector<1x20x32xbf16>
    %12 = vector.shape_cast %11 : vector<1x20x32xbf16> to vector<20x32xbf16>
    %c2 = arith.constant 2 : index
    %c0_13 = arith.constant 0 : index
    %c0_14 = arith.constant 0 : index
    %13 = vector.load %arg3[%c2, %c0_13, %c0_14] : memref<4x32x128xbf16, #tpu.memory_space<vmem>>, vector<1x32x128xbf16>
    %14 = vector.shape_cast %13 : vector<1x32x128xbf16> to vector<32x128xbf16>
    %cst_15 = arith.constant dense<0.000000e+00> : vector<20x128xf32>
    %15 = tpu.matmul %12, %14, %cst_15 {dimension_numbers = #tpu.dot_dimension_numbers<[1], [0], [0], [1], [0, 0, 1, 1], [], []>} : vector<20x32xbf16>, vector<32x128xbf16>, vector<20x128xf32> -> vector<20x128xf32>
    %16 = arith.addf %10, %15 : vector<20x128xf32>
    %c0_16 = arith.constant 0 : index
    %c6 = arith.constant 6 : index
    %c0_17 = arith.constant 0 : index
    %17 = vector.load %arg2[%c0_16, %c6, %c0_17] : memref<1x26x32xbf16, #tpu.memory_space<vmem>>, vector<1x20x32xbf16>
    %18 = vector.shape_cast %17 : vector<1x20x32xbf16> to vector<20x32xbf16>
    %c3 = arith.constant 3 : index
    %c0_18 = arith.constant 0 : index
    %c0_19 = arith.constant 0 : index
    %19 = vector.load %arg3[%c3, %c0_18, %c0_19] : memref<4x32x128xbf16, #tpu.memory_space<vmem>>, vector<1x32x128xbf16>
    %20 = vector.shape_cast %19 : vector<1x32x128xbf16> to vector<32x128xbf16>
    %cst_20 = arith.constant dense<0.000000e+00> : vector<20x128xf32>
    %21 = tpu.matmul %18, %20, %cst_20 {dimension_numbers = #tpu.dot_dimension_numbers<[1], [0], [0], [1], [0, 0, 1, 1], [], []>} : vector<20x32xbf16>, vector<32x128xbf16>, vector<20x128xf32> -> vector<20x128xf32>
    %22 = arith.addf %16, %21 : vector<20x128xf32>
    %c0_21 = arith.constant 0 : index
    %c0_22 = arith.constant 0 : index
    %23 = vector.load %arg4[%c0_21, %c0_22] : memref<1x128xf32, #tpu.memory_space<vmem>>, vector<1x128xf32>
    %24 = vector.broadcast %23 : vector<1x128xf32> to vector<20x128xf32>
    %25 = arith.addf %22, %24 : vector<20x128xf32>
    %cst_23 = arith.constant 0.000000e+00 : f32
    %26 = vector.broadcast %cst_23 : f32 to vector<20x128xf32>
    %27 = arith.cmpf oge, %25, %26 : vector<20x128xf32>
    %cst_24 = arith.constant 0.00999999977 : f32
    %28 = vector.broadcast %cst_24 : f32 to vector<20x128xf32>
    %29 = arith.mulf %28, %25 : vector<20x128xf32>
    %30 = arith.select %27, %25, %29 : vector<20x128xi1>, vector<20x128xf32>
    %31 = arith.truncf %30 : vector<20x128xf32> to vector<20x128xbf16>
    %c0_25 = arith.constant 0 : index
    %c0_26 = arith.constant 0 : index
    %c0_27 = arith.constant 0 : index
    %32 = vector.load %arg5[%c0_25, %c0_26, %c0_27] : memref<1x20x128xbf16, #tpu.memory_space<vmem>>, vector<1x20x128xbf16>
    %33 = vector.shape_cast %32 : vector<1x20x128xbf16> to vector<20x128xbf16>
    %34 = vector.shape_cast %31 : vector<20x128xbf16> to vector<1x20x128xbf16>
    tpu.vector_store %arg5[%c0_25, %c0_26, %c0_27], %34 {strides = array<i32>} : memref<1x20x128xbf16, #tpu.memory_space<vmem>>, vector<1x20x128xbf16>,
    return
  }
  func.func @transform_0(%arg0: i32, %arg1: i32) -> (i32, i32, i32) {
    %c0_i32 = arith.constant 0 : i32
    %c0_i32_0 = arith.constant 0 : i32
    %c0_i32_1 = arith.constant 0 : i32
    return %arg0, %c0_i32, %c0_i32_0 : i32, i32, i32
  }
  func.func @transform_1(%arg0: i32, %arg1: i32) -> (i32, i32, i32) {
    %c0_i32 = arith.constant 0 : i32
    %c0_i32_0 = arith.constant 0 : i32
    %c0_i32_1 = arith.constant 0 : i32
    return %c0_i32, %c0_i32_0, %arg1 : i32, i32, i32
  }
  func.func @transform_2(%arg0: i32, %arg1: i32) -> (i32, i32) {
    %c0_i32 = arith.constant 0 : i32
    %c0_i32_0 = arith.constant 0 : i32
    return %c0_i32, %arg1 : i32, i32
  }
  func.func @transform_3(%arg0: i32, %arg1: i32) -> (i32, i32, i32) {
    %c0_i32 = arith.constant 0 : i32
    %c0_i32_0 = arith.constant 0 : i32
    return %arg0, %c0_i32, %arg1 : i32, i32, i32
  }
}

module attributes {stable_mosaic.version = 11 : i64} {
  func.func @_dense_kernel(%arg0: i32, %arg1: i32, %arg2: memref<16x256xbf16, #tpu.memory_space<vmem>>, %arg3: memref<256x128xbf16, #tpu.memory_space<vmem>>, %arg4: memref<1x128xf32, #tpu.memory_space<vmem>>, %arg5: memref<16x128xf32, #tpu.memory_space<vmem>>) attributes {dimension_semantics = [#tpu.dimension_semantics<parallel>, #tpu.dimension_semantics<parallel>], iteration_bounds = array<i64: 1, 1>, scalar_prefetch = 0 : i64, scratch_operands = 0 : i64, tpu.core_type = #tpu.core_type<tc>, window_params = [{transform_indices = @transform_0, window_bounds = array<i64: 16, 256>}, {transform_indices = @transform_1, window_bounds = array<i64: 256, 128>}, {transform_indices = @transform_2, window_bounds = array<i64: 1, 128>}, {transform_indices = @transform_3, window_bounds = array<i64: 16, 128>}]} {
    %c0 = arith.constant 0 : index
    %c0_0 = arith.constant 0 : index
    %0 = vector.load %arg2[%c0, %c0_0] : memref<16x256xbf16, #tpu.memory_space<vmem>>, vector<16x256xbf16>
    %c0_1 = arith.constant 0 : index
    %c0_2 = arith.constant 0 : index
    %1 = vector.load %arg3[%c0_1, %c0_2] : memref<256x128xbf16, #tpu.memory_space<vmem>>, vector<256x128xbf16>
    %cst = arith.constant dense<0.000000e+00> : vector<16x128xf32>
    %2 = tpu.matmul %0, %1, %cst {dimension_numbers = #tpu.dot_dimension_numbers<[1], [0], [0], [1], [0, 0, 1, 1], [], []>} : vector<16x256xbf16>, vector<256x128xbf16>, vector<16x128xf32> -> vector<16x128xf32>
    %c0_3 = arith.constant 0 : index
    %c0_4 = arith.constant 0 : index
    %3 = vector.load %arg4[%c0_3, %c0_4] : memref<1x128xf32, #tpu.memory_space<vmem>>, vector<1x128xf32>
    %4 = vector.broadcast %3 : vector<1x128xf32> to vector<16x128xf32>
    %5 = arith.addf %2, %4 : vector<16x128xf32>
    %c0_5 = arith.constant 0 : index
    %c0_6 = arith.constant 0 : index
    %6 = vector.load %arg5[%c0_5, %c0_6] : memref<16x128xf32, #tpu.memory_space<vmem>>, vector<16x128xf32>
    tpu.vector_store %arg5[%c0_5, %c0_6], %5 {strides = array<i32>} : memref<16x128xf32, #tpu.memory_space<vmem>>, vector<16x128xf32>,
    return
  }
  func.func @transform_0(%arg0: i32, %arg1: i32) -> (i32, i32) {
    %c0_i32 = arith.constant 0 : i32
    %c0_i32_0 = arith.constant 0 : i32
    return %arg0, %c0_i32 : i32, i32
  }
  func.func @transform_1(%arg0: i32, %arg1: i32) -> (i32, i32) {
    %c0_i32 = arith.constant 0 : i32
    %c0_i32_0 = arith.constant 0 : i32
    return %c0_i32, %arg1 : i32, i32
  }
  func.func @transform_2(%arg0: i32, %arg1: i32) -> (i32, i32) {
    %c0_i32 = arith.constant 0 : i32
    %c0_i32_0 = arith.constant 0 : i32
    return %c0_i32, %arg1 : i32, i32
  }
  func.func @transform_3(%arg0: i32, %arg1: i32) -> (i32, i32) {
    %c0_i32 = arith.constant 0 : i32
    return %arg0, %arg1 : i32, i32
  }
}

module attributes {stable_mosaic.version = 11 : i64} {
  func.func @_tap_conv_kernel(%arg0: i32, %arg1: i32, %arg2: memref<1x38x16xbf16, #tpu.memory_space<vmem>>, %arg3: memref<9x16x128xbf16, #tpu.memory_space<vmem>>, %arg4: memref<1x128xf32, #tpu.memory_space<vmem>>, %arg5: memref<1x24x128xf32, #tpu.memory_space<vmem>>) attributes {dimension_semantics = [#tpu.dimension_semantics<parallel>, #tpu.dimension_semantics<parallel>], iteration_bounds = array<i64: 2, 1>, scalar_prefetch = 0 : i64, scratch_operands = 0 : i64, tpu.core_type = #tpu.core_type<tc>, window_params = [{transform_indices = @transform_0, window_bounds = array<i64: 1, 38, 16>}, {transform_indices = @transform_1, window_bounds = array<i64: 9, 16, 128>}, {transform_indices = @transform_2, window_bounds = array<i64: 1, 128>}, {transform_indices = @transform_3, window_bounds = array<i64: 1, 24, 128>}]} {
    %c0 = arith.constant 0 : index
    %c0_0 = arith.constant 0 : index
    %c0_1 = arith.constant 0 : index
    %0 = vector.load %arg2[%c0, %c0_0, %c0_1] : memref<1x38x16xbf16, #tpu.memory_space<vmem>>, vector<1x24x16xbf16>
    %1 = vector.shape_cast %0 : vector<1x24x16xbf16> to vector<24x16xbf16>
    %c0_2 = arith.constant 0 : index
    %c0_3 = arith.constant 0 : index
    %c0_4 = arith.constant 0 : index
    %2 = vector.load %arg3[%c0_2, %c0_3, %c0_4] : memref<9x16x128xbf16, #tpu.memory_space<vmem>>, vector<1x16x128xbf16>
    %3 = vector.shape_cast %2 : vector<1x16x128xbf16> to vector<16x128xbf16>
    %cst = arith.constant dense<0.000000e+00> : vector<24x128xf32>
    %4 = tpu.matmul %1, %3, %cst {dimension_numbers = #tpu.dot_dimension_numbers<[1], [0], [0], [1], [0, 0, 1, 1], [], []>} : vector<24x16xbf16>, vector<16x128xbf16>, vector<24x128xf32> -> vector<24x128xf32>
    %c0_5 = arith.constant 0 : index
    %c1 = arith.constant 1 : index
    %c0_6 = arith.constant 0 : index
    %5 = vector.load %arg2[%c0_5, %c1, %c0_6] : memref<1x38x16xbf16, #tpu.memory_space<vmem>>, vector<1x24x16xbf16>
    %6 = vector.shape_cast %5 : vector<1x24x16xbf16> to vector<24x16xbf16>
    %c1_7 = arith.constant 1 : index
    %c0_8 = arith.constant 0 : index
    %c0_9 = arith.constant 0 : index
    %7 = vector.load %arg3[%c1_7, %c0_8, %c0_9] : memref<9x16x128xbf16, #tpu.memory_space<vmem>>, vector<1x16x128xbf16>
    %8 = vector.shape_cast %7 : vector<1x16x128xbf16> to vector<16x128xbf16>
    %cst_10 = arith.constant dense<0.000000e+00> : vector<24x128xf32>
    %9 = tpu.matmul %6, %8, %cst_10 {dimension_numbers = #tpu.dot_dimension_numbers<[1], [0], [0], [1], [0, 0, 1, 1], [], []>} : vector<24x16xbf16>, vector<16x128xbf16>, vector<24x128xf32> -> vector<24x128xf32>
    %10 = arith.addf %4, %9 : vector<24x128xf32>
    %c0_11 = arith.constant 0 : index
    %c2 = arith.constant 2 : index
    %c0_12 = arith.constant 0 : index
    %11 = vector.load %arg2[%c0_11, %c2, %c0_12] : memref<1x38x16xbf16, #tpu.memory_space<vmem>>, vector<1x24x16xbf16>
    %12 = vector.shape_cast %11 : vector<1x24x16xbf16> to vector<24x16xbf16>
    %c2_13 = arith.constant 2 : index
    %c0_14 = arith.constant 0 : index
    %c0_15 = arith.constant 0 : index
    %13 = vector.load %arg3[%c2_13, %c0_14, %c0_15] : memref<9x16x128xbf16, #tpu.memory_space<vmem>>, vector<1x16x128xbf16>
    %14 = vector.shape_cast %13 : vector<1x16x128xbf16> to vector<16x128xbf16>
    %cst_16 = arith.constant dense<0.000000e+00> : vector<24x128xf32>
    %15 = tpu.matmul %12, %14, %cst_16 {dimension_numbers = #tpu.dot_dimension_numbers<[1], [0], [0], [1], [0, 0, 1, 1], [], []>} : vector<24x16xbf16>, vector<16x128xbf16>, vector<24x128xf32> -> vector<24x128xf32>
    %16 = arith.addf %10, %15 : vector<24x128xf32>
    %c0_17 = arith.constant 0 : index
    %c6 = arith.constant 6 : index
    %c0_18 = arith.constant 0 : index
    %17 = vector.load %arg2[%c0_17, %c6, %c0_18] : memref<1x38x16xbf16, #tpu.memory_space<vmem>>, vector<1x24x16xbf16>
    %18 = vector.shape_cast %17 : vector<1x24x16xbf16> to vector<24x16xbf16>
    %c3 = arith.constant 3 : index
    %c0_19 = arith.constant 0 : index
    %c0_20 = arith.constant 0 : index
    %19 = vector.load %arg3[%c3, %c0_19, %c0_20] : memref<9x16x128xbf16, #tpu.memory_space<vmem>>, vector<1x16x128xbf16>
    %20 = vector.shape_cast %19 : vector<1x16x128xbf16> to vector<16x128xbf16>
    %cst_21 = arith.constant dense<0.000000e+00> : vector<24x128xf32>
    %21 = tpu.matmul %18, %20, %cst_21 {dimension_numbers = #tpu.dot_dimension_numbers<[1], [0], [0], [1], [0, 0, 1, 1], [], []>} : vector<24x16xbf16>, vector<16x128xbf16>, vector<24x128xf32> -> vector<24x128xf32>
    %22 = arith.addf %16, %21 : vector<24x128xf32>
    %c0_22 = arith.constant 0 : index
    %c7 = arith.constant 7 : index
    %c0_23 = arith.constant 0 : index
    %23 = vector.load %arg2[%c0_22, %c7, %c0_23] : memref<1x38x16xbf16, #tpu.memory_space<vmem>>, vector<1x24x16xbf16>
    %24 = vector.shape_cast %23 : vector<1x24x16xbf16> to vector<24x16xbf16>
    %c4 = arith.constant 4 : index
    %c0_24 = arith.constant 0 : index
    %c0_25 = arith.constant 0 : index
    %25 = vector.load %arg3[%c4, %c0_24, %c0_25] : memref<9x16x128xbf16, #tpu.memory_space<vmem>>, vector<1x16x128xbf16>
    %26 = vector.shape_cast %25 : vector<1x16x128xbf16> to vector<16x128xbf16>
    %cst_26 = arith.constant dense<0.000000e+00> : vector<24x128xf32>
    %27 = tpu.matmul %24, %26, %cst_26 {dimension_numbers = #tpu.dot_dimension_numbers<[1], [0], [0], [1], [0, 0, 1, 1], [], []>} : vector<24x16xbf16>, vector<16x128xbf16>, vector<24x128xf32> -> vector<24x128xf32>
    %28 = arith.addf %22, %27 : vector<24x128xf32>
    %c0_27 = arith.constant 0 : index
    %c8 = arith.constant 8 : index
    %c0_28 = arith.constant 0 : index
    %29 = vector.load %arg2[%c0_27, %c8, %c0_28] : memref<1x38x16xbf16, #tpu.memory_space<vmem>>, vector<1x24x16xbf16>
    %30 = vector.shape_cast %29 : vector<1x24x16xbf16> to vector<24x16xbf16>
    %c5 = arith.constant 5 : index
    %c0_29 = arith.constant 0 : index
    %c0_30 = arith.constant 0 : index
    %31 = vector.load %arg3[%c5, %c0_29, %c0_30] : memref<9x16x128xbf16, #tpu.memory_space<vmem>>, vector<1x16x128xbf16>
    %32 = vector.shape_cast %31 : vector<1x16x128xbf16> to vector<16x128xbf16>
    %cst_31 = arith.constant dense<0.000000e+00> : vector<24x128xf32>
    %33 = tpu.matmul %30, %32, %cst_31 {dimension_numbers = #tpu.dot_dimension_numbers<[1], [0], [0], [1], [0, 0, 1, 1], [], []>} : vector<24x16xbf16>, vector<16x128xbf16>, vector<24x128xf32> -> vector<24x128xf32>
    %34 = arith.addf %28, %33 : vector<24x128xf32>
    %c0_32 = arith.constant 0 : index
    %c12 = arith.constant 12 : index
    %c0_33 = arith.constant 0 : index
    %35 = vector.load %arg2[%c0_32, %c12, %c0_33] : memref<1x38x16xbf16, #tpu.memory_space<vmem>>, vector<1x24x16xbf16>
    %36 = vector.shape_cast %35 : vector<1x24x16xbf16> to vector<24x16xbf16>
    %c6_34 = arith.constant 6 : index
    %c0_35 = arith.constant 0 : index
    %c0_36 = arith.constant 0 : index
    %37 = vector.load %arg3[%c6_34, %c0_35, %c0_36] : memref<9x16x128xbf16, #tpu.memory_space<vmem>>, vector<1x16x128xbf16>
    %38 = vector.shape_cast %37 : vector<1x16x128xbf16> to vector<16x128xbf16>
    %cst_37 = arith.constant dense<0.000000e+00> : vector<24x128xf32>
    %39 = tpu.matmul %36, %38, %cst_37 {dimension_numbers = #tpu.dot_dimension_numbers<[1], [0], [0], [1], [0, 0, 1, 1], [], []>} : vector<24x16xbf16>, vector<16x128xbf16>, vector<24x128xf32> -> vector<24x128xf32>
    %40 = arith.addf %34, %39 : vector<24x128xf32>
    %c0_38 = arith.constant 0 : index
    %c13 = arith.constant 13 : index
    %c0_39 = arith.constant 0 : index
    %41 = vector.load %arg2[%c0_38, %c13, %c0_39] : memref<1x38x16xbf16, #tpu.memory_space<vmem>>, vector<1x24x16xbf16>
    %42 = vector.shape_cast %41 : vector<1x24x16xbf16> to vector<24x16xbf16>
    %c7_40 = arith.constant 7 : index
    %c0_41 = arith.constant 0 : index
    %c0_42 = arith.constant 0 : index
    %43 = vector.load %arg3[%c7_40, %c0_41, %c0_42] : memref<9x16x128xbf16, #tpu.memory_space<vmem>>, vector<1x16x128xbf16>
    %44 = vector.shape_cast %43 : vector<1x16x128xbf16> to vector<16x128xbf16>
    %cst_43 = arith.constant dense<0.000000e+00> : vector<24x128xf32>
    %45 = tpu.matmul %42, %44, %cst_43 {dimension_numbers = #tpu.dot_dimension_numbers<[1], [0], [0], [1], [0, 0, 1, 1], [], []>} : vector<24x16xbf16>, vector<16x128xbf16>, vector<24x128xf32> -> vector<24x128xf32>
    %46 = arith.addf %40, %45 : vector<24x128xf32>
    %c0_44 = arith.constant 0 : index
    %c14 = arith.constant 14 : index
    %c0_45 = arith.constant 0 : index
    %47 = vector.load %arg2[%c0_44, %c14, %c0_45] : memref<1x38x16xbf16, #tpu.memory_space<vmem>>, vector<1x24x16xbf16>
    %48 = vector.shape_cast %47 : vector<1x24x16xbf16> to vector<24x16xbf16>
    %c8_46 = arith.constant 8 : index
    %c0_47 = arith.constant 0 : index
    %c0_48 = arith.constant 0 : index
    %49 = vector.load %arg3[%c8_46, %c0_47, %c0_48] : memref<9x16x128xbf16, #tpu.memory_space<vmem>>, vector<1x16x128xbf16>
    %50 = vector.shape_cast %49 : vector<1x16x128xbf16> to vector<16x128xbf16>
    %cst_49 = arith.constant dense<0.000000e+00> : vector<24x128xf32>
    %51 = tpu.matmul %48, %50, %cst_49 {dimension_numbers = #tpu.dot_dimension_numbers<[1], [0], [0], [1], [0, 0, 1, 1], [], []>} : vector<24x16xbf16>, vector<16x128xbf16>, vector<24x128xf32> -> vector<24x128xf32>
    %52 = arith.addf %46, %51 : vector<24x128xf32>
    %c0_50 = arith.constant 0 : index
    %c0_51 = arith.constant 0 : index
    %53 = vector.load %arg4[%c0_50, %c0_51] : memref<1x128xf32, #tpu.memory_space<vmem>>, vector<1x128xf32>
    %54 = vector.broadcast %53 : vector<1x128xf32> to vector<24x128xf32>
    %55 = arith.addf %52, %54 : vector<24x128xf32>
    %c0_52 = arith.constant 0 : index
    %c0_53 = arith.constant 0 : index
    %c0_54 = arith.constant 0 : index
    %56 = vector.load %arg5[%c0_52, %c0_53, %c0_54] : memref<1x24x128xf32, #tpu.memory_space<vmem>>, vector<1x24x128xf32>
    %57 = vector.shape_cast %56 : vector<1x24x128xf32> to vector<24x128xf32>
    %58 = vector.shape_cast %55 : vector<24x128xf32> to vector<1x24x128xf32>
    tpu.vector_store %arg5[%c0_52, %c0_53, %c0_54], %58 {strides = array<i32>} : memref<1x24x128xf32, #tpu.memory_space<vmem>>, vector<1x24x128xf32>,
    return
  }
  func.func @transform_0(%arg0: i32, %arg1: i32) -> (i32, i32, i32) {
    %c0_i32 = arith.constant 0 : i32
    %c0_i32_0 = arith.constant 0 : i32
    %c0_i32_1 = arith.constant 0 : i32
    return %arg0, %c0_i32, %c0_i32_0 : i32, i32, i32
  }
  func.func @transform_1(%arg0: i32, %arg1: i32) -> (i32, i32, i32) {
    %c0_i32 = arith.constant 0 : i32
    %c0_i32_0 = arith.constant 0 : i32
    %c0_i32_1 = arith.constant 0 : i32
    return %c0_i32, %c0_i32_0, %arg1 : i32, i32, i32
  }
  func.func @transform_2(%arg0: i32, %arg1: i32) -> (i32, i32) {
    %c0_i32 = arith.constant 0 : i32
    %c0_i32_0 = arith.constant 0 : i32
    return %c0_i32, %arg1 : i32, i32
  }
  func.func @transform_3(%arg0: i32, %arg1: i32) -> (i32, i32, i32) {
    %c0_i32 = arith.constant 0 : i32
    %c0_i32_0 = arith.constant 0 : i32
    return %arg0, %c0_i32, %arg1 : i32, i32, i32
  }
}

</mosaic_0001>

<bundles_post_ra>
// kernel: _lambda_.10
= control target key start
LH: loop header
LB: loop body
LE: loop exit
PB: predicated region body
PF: predicated region fallthrough
CT: control target
= control target key end

     0   :  { %s935_s17 = smov 0   ;;  %s937_s18 = smov 0   ;;  %s1022_s0 = inlined_call_operand.vmem [shape: bf16[4,32,128], index: 0, kind: input, shape index: {}]   ;;  %s1023_s1 = inlined_call_operand.vmem [shape: f32[1,128], index: 1, kind: input, shape index: {}]   ;;  %s1024_s2 = inlined_call_operand.vmem [shape: bf16[2,25,32], index: 2, kind: input, shape index: {}]   ;;  %s1025_s3 = inlined_call_operand.<no memory space> [shape: bf16[], index: 3, kind: input, shape index: {}]   ;;  %s1026_s4 = inlined_call_operand.vmem [shape: bf16[2,20,128], index: 4, kind: output, shape index: {}]  }
   0x1   :  { %v9_v0 = vstv %s1025_s3  ;;  %s939_s19 = smov 0  }
   0x2   :  { %v933_v1 = vunpack.i.l.bf16 %v9_v0 }
   0x3 LB: > { %s31_s3 = sadd.s32 1, %s898_s18  ;;  %p758_p0 = scmp.ge.s32.totalorder %s902_s19, 1  ;;  %s902_s19 = sphi %s939_s19, %s19_s19   ;;  %s898_s18 = sphi %s937_s18, %s1028_s18   ;;  %s894_s17 = sphi %s935_s17, %s1027_s17  }
   0x4   : > { %p33_p1 = scmp.ge.s32.totalorder %s31_s3, 2  ;;  %p174_p2 = scmp.lt.s32.totalorder %s902_s19, 3 }
   0x6   : > { %s1030_s3 = smov (%p33_p1, %s31_s3), 0  ;;  %p175_p3 = pnand %p758_p0, %p174_p2 }
   0x8   : > { %178 = sbr.rel (%p175_p3) target bundleno = 277 (0x115), region = 32 }
   0xf   : > { %v765_v2 = vld [vmem:[%s1022_s0 + $0x10] sm:$0xff]  ;;  %v311_v3 = vld [vmem:[%s1022_s0] sm:$0xff]  ;;  %v766_v4 = vld [vmem:[%s1022_s0 + $0x18] sm:$0xff]  ;;  %p208_p4 = scmp.lt.s32.totalorder %s894_s17, 1  ;;  %v236_v5 = vlaneseq  ;;  %v904_v22 = vmov 0.0   ;;  %vm341_vm2 = vcmask 261120  }
  0x10   : > { %816 = vmatprep.subr.bf16.mxu0 %v765_v2  ;;  %824 = vmatprep.subr.bf16.mxu1 %v311_v3  ;;  %v312_v6 = vld [vmem:[%s1022_s0 + $0x8] sm:$0xff]  ;;  %v971_v10 = vld [vmem:[%s1022_s0 + $0x20] sm:$0xff]  ;;  %v780_v11 = vld [vmem:[%s1022_s0 + $0x30] sm:$0xff]  ;;  %vm325_vm3 = vsmask.f32 7424  ;;  %vm551_vm4 = vcmask 1044480  }
  0x11   : > { %817 = vmatpush3.bf16.msra.mxu0 %v765_v2  ;;  %825 = vmatpush3.bf16.msra.mxu1 %v311_v3  ;;  %s1032_s17 = smov (!%p208_p4, %s894_s17), 1  ;;  %v237_v7 = vand.u32 127, %v236_v5  ;;  %v294_v8 = vshrl.u32 %v236_v5, 7  ;;  %v781_v37 = vld [vmem:[%s1022_s0 + $0x38] sm:$0xff]  ;;  %v775_v52 = vld [vmem:[%s1022_s0 + $0x28] sm:$0xff] }
  0x12   : > { %818 = vmatprep.subr.bf16.mxu0 %v766_v4  ;;  %826 = vmatprep.subr.bf16.mxu1 %v312_v6  ;;  %s791_s28 = sshll.u32 %s1032_s17, 4  ;;  %vm469_vm5 = vsmask.f32 5376  ;;  %s848_s16 = smul.u32 12, %s1032_s17 }
  0x13   : > { %v295_v9 = vadd.s32 24, %v294_v8  ;;  %s212_s9 = scalar_lea.vmem %s1024_s2, %s791_s28  ;;  %vm239_vm0 = vcmp.lt.s32.totalorder %v237_v7, 32 }
  0x14   : > { %v228_v12 = vld [vmem:[%s212_s9] sm:$0xff]   ;;  %v764_v13 = vld [vmem:[%s212_s9 + $0x8] sm:$0xff]   ;;  %s227_s22 = scalar_lea.vmem %s1026_s4, %s848_s16 }
  0x15   : > { %819 = vmatpush3.bf16.msra.mxu0 %v766_v4  ;;  %827 = vmatpush3.bf16.msra.mxu1 %v312_v6  ;;  %vm296_vm1 = vcmp.lt.s32.totalorder %v295_v9, 25  ;;  %v229_v14 = vunpack.c.l.bf16 %v228_v12  ;;  %v246_v15 = vunpack.c.h.bf16 %v228_v12  ;;  %v291_v16 = vunpack.c.h.bf16 %v764_v13 }
  0x16   : > { %v264_v17 = vunpack.c.l.bf16 %v764_v13  ;;  %832 = vmatprep.subr.bf16.mxu0 %v971_v10  ;;  %840 = vmatprep.subr.bf16.mxu1 %v780_v11 }
  0x17   : > { %v240_v18 = vsel %vm239_vm0, %v229_v14, %v933_v1  ;;  %v257_v19 = vsel %vm239_vm0, %v246_v15, %v933_v1  ;;  %v297_v20 = vsel %vm296_vm1, %v291_v16, %v933_v1 }
  0x18   : > { %v275_v21 = vsel %vm239_vm0, %v264_v17, %v933_v1  ;;  %v241_v23 = vpack.c.bf16 %v904_v22, %v240_v18  ;;  %v259_v24 = vpack.c.bf16 %v904_v22, %v257_v19  ;;  %v302_v25 = vsel %vm239_vm0, %v297_v20, %v933_v1  ;;  %v785_v17 = vld [vmem:[%s1023_s1] ss:$0 sm:$0xff] }
  0x19   : > { %v277_v26 = vpack.c.bf16 %v904_v22, %v275_v21  ;;  %v304_v27 = vpack.c.bf16 %v904_v22, %v302_v25 }
  0x1a   : > { %243 = vst [vmem:[#allocation7] sm:$0xf] %v241_v23  ;;  %261 = vst [vmem:[#allocation7 + $0x4] sm:$0xf] %v259_v24 }
  0x1b   : > { %279 = vst [vmem:[#allocation7 + $0x8] sm:$0xf] %v277_v26  ;;  %306 = vst [vmem:[#allocation7 + $0xc] sm:$0xf] %v304_v27 }
  0x21   : > { %v874_v28 = vld [vmem:[#allocation7] sm:$0xff]  }
  0x22   : > { %v875_v29 = vld [vmem:[#allocation7 + $0x8] ss:$0 sps:$4 sm:$0x77]   ;;  %828 = vmatprep.mubr.msk.bf16.mxu1 %vm341_vm2, %v874_v28  ;;  %v327_v30 = vshrl.u32 %v874_v28, 16  ;;  %v329_v31 = vshll.u32 %v874_v28, 16 }
  0x23   : > { %v452_v32 = vld [vmem:[#allocation7] sm:$0xc]  ;;  %v334_v33 = vshll.u32 %v875_v29, 16  ;;  %v338_v34 = vshrl.u32 %v875_v29, 16  ;;  %v453_v38 = vld [vmem:[#allocation7 + $0x4] sm:$0xf] }
  0x24   : > { %v876_v35 = vld [vmem:[#allocation7 + $0x8] ss:$0 sps:$4 sm:$0x33]   ;;  %v331_v36 = vrot.slane %v329_v31, 1  ;;  %v776_v40 = vcombine.low %v452_v32, %v453_v38  ;;  %v544_v43 = vld [vmem:[#allocation7] sm:$0x8] }
  0x25   : > { %v336_v39 = vrot.slane %v334_v33, 1  ;;  %829 = vmatmul.mubr.msk.bf16.vlgmr.msra.gmra.mrb[0].mxu1 %vm341_vm2, %v876_v35  ;;  %v878_v41 = vld [vmem:[#allocation7 + $0x8] sm:$0x1f]   ;;  %v782_v45 = vcombine.low %v544_v43, %v453_v38 }
  0x26   : > { %v332_v42 = vor.u32 %v331_v36, %v327_v30  ;;  %841 = vmatpush3.bf16.msra.mxu1 %v780_v11  ;;  %v553_v46 = vrot.slane %v878_v41, 3  ;;  %v471_v47 = vshrl.u32 %v776_v40, 16  ;;  %v474_v49 = vshll.u32 %v776_v40, 16 }
  0x27   : > { %v340_v44 = vor.u32 %v338_v34, %v336_v39  ;;  %842 = vmatprep.subr.bf16.mxu1 %v781_v37  ;;  %v479_v50 = vshrl.u32 %v878_v41, 16  ;;  %v482_v51 = vshll.u32 %v878_v41, 16  ;;  %v552_v53 = vrot.slane %v782_v45, 3 }
  0x28   : > { %v337_v48 = vsel %vm325_vm3, %v332_v42, %v336_v39  ;;  %v473_v54 = vrot.slane %v471_v47, 2  ;;  %v476_v55 = vrot.slane %v474_v49, 3 }
  0x29   : > { %820 = vmatprep.mubr.msk.bf16.mxu0 %vm341_vm2, %v337_v48  ;;  %v481_v56 = vrot.slane %v479_v50, 2  ;;  %v484_v57 = vrot.slane %v482_v51, 3  ;;  %v554_v58 = vsel %vm551_vm4, %v552_v53, %v553_v46 }
  0x2a   : > { %821 = vmatmul.mubr.msk.bf16.vlgmr.msra.gmra.mrb[0].mxu0 %vm341_vm2, %v340_v44  ;;  %843 = vmatpush3.bf16.msra.mxu1 %v781_v37  ;;  %v477_v59 = vor.u32 %v476_v55, %v473_v54 }
  0x2b   : > { %833 = vmatpush3.bf16.msra.mxu0 %v971_v10  ;;  %844 = vmatprep.mubr.msk.bf16.mxu1 %vm341_vm2, %v554_v58  ;;  %v485_v60 = vor.u32 %v484_v57, %v481_v56 }
  0x2c   : > { %834 = vmatprep.subr.bf16.mxu0 %v775_v52 }
  0x2d   : > { %845 = vmatmul.mubr.msk.bf16.vlgmr.msra.gmra.mrb[4].mxu1 %vm341_vm2, %v553_v46  ;;  %v486_v61 = vsel %vm469_vm5, %v477_v59, %v485_v60 }
  0x2e   : > { %836 = vmatprep.mubr.msk.bf16.mxu0 %vm341_vm2, %v486_v61 }
  0x2f   : > { %835 = vmatpush3.bf16.msra.mxu0 %v775_v52 }
  0x32   : > { %837 = vmatmul.mubr.msk.bf16.vlgmr.msra.gmra.mrb[4].mxu0 %vm341_vm2, %v485_v60 }
  0xf8   : > { %v830_v62 = vpop.f32.mrb[0].mxu1 }
  0xf9   : > { %v438_v63 = vpop.f32.mrb[1].mxu1 }
  0xfa   : > { %v831_v0 = vpop.f32.mrb[2].mxu1 }
  0xfb   : > { %v441_v2 = vpop.f32.mrb[3].mxu1 }
  0xfd   : > { %v822_v3 = vpop.f32.mrb[0].mxu0 }
  0xfe   : > { %v447_v4 = vadd.f32 %v830_v62, %v822_v3  ;;  %v382_v5 = vpop.f32.mrb[1].mxu0 }
  0xff   : > { %v439_v6 = vadd.f32 %v438_v63, %v382_v5  ;;  %v823_v7 = vpop.f32.mrb[2].mxu0 }
 0x100   : > { %v385_v8 = vpop.f32.mrb[3].mxu0  ;;  %v846_v9 = vpop.f32.mrb[4].mxu1 }
 0x101   : > { %v442_v10 = vadd.f32 %v441_v2, %v385_v8  ;;  %v595_v11 = vpop.f32.mrb[5].mxu1 }
 0x102   : > { %v847_v12 = vpop.f32.mrb[6].mxu1 }
 0x103   : > { %v598_v13 = vpop.f32.mrb[7].mxu1 }
 0x105   : > { %v838_v14 = vpop.f32.mrb[4].mxu0 }
 0x106   : > { %v543_v15 = vadd.f32 %v838_v14, %v447_v4  ;;  %v527_v16 = vpop.f32.mrb[5].mxu0 }
 0x107   : > { %v541_v18 = vadd.f32 %v527_v16, %v439_v6  ;;  %v839_v19 = vpop.f32.mrb[6].mxu0 }
 0x108   : > { %v611_v20 = vadd.f32 %v846_v9, %v543_v15  ;;  %v530_v21 = vpop.f32.mrb[7].mxu0 }
 0x109   : > { %v609_v22 = vadd.f32 %v595_v11, %v541_v18  ;;  %v542_v23 = vadd.f32 %v530_v21, %v442_v10 }
 0x10a   : > { %v621_v24 = vadd.f32 %v785_v17, %v611_v20 }
 0x10b   : > { %v619_v25 = vadd.f32 %v785_v17, %v609_v22  ;;  %v610_v26 = vadd.f32 %v598_v13, %v542_v23 }
 0x10c   : > { %vm624_vm6 = vcmp.ge.f32.partialorder %v621_v24, 0.0  ;;  %v627_v27 = vmul.f32 0.01, %v621_v24 }
 0x10d   : > { %v625_v28 = vmul.f32 0.01, %v619_v25  ;;  %v620_v29 = vadd.f32 %v785_v17, %v610_v26  ;;  %vm622_vm7 = vcmp.ge.f32.partialorder %v619_v25, 0.0 }
 0x10e   : > { %v630_v30 = vsel %vm624_vm6, %v621_v24, %v627_v27 }
 0x10f   : > { %v794_v31 = vpack.c.bf16 %v630_v30, %v630_v30  ;;  %vm623_vm8 = vcmp.ge.f32.partialorder %v620_v29, 0.0  ;;  %v626_v32 = vmul.f32 0.01, %v620_v29  ;;  %v628_v33 = vsel %vm622_vm7, %v619_v25, %v625_v28 }
 0x111   : > { %646 = vst [vmem:[%s227_s22 + $0x8] sm:$0x3] %v794_v31  ;;  %v629_v34 = vsel %vm623_vm8, %v620_v29, %v626_v32 }
 0x112   : > { %v798_v35 = vpack.c.bf16 %v629_v34, %v628_v33 }
 0x114   : > { %799 = vst [vmem:[%s227_s22] sm:$0xff] %v798_v35  }
 0x115 PF: > { %s19_s19 = sadd.s32 1, %s902_s19   ;;  %s1027_s17 = smov %s898_s18 }
 0x116   : > { %p16_p5 = scmp.ge.s32.totalorder %s19_s19, 4   ;;  %s1028_s18 = smov %s1030_s3 }
 0x118   :  { %18 = sbr.rel (!%p16_p5) target bundleno = 3 (0x3), region = 77 }

// kernel: _lambda_.11
= control target key start
LH: loop header
LB: loop body
LE: loop exit
PB: predicated region body
PF: predicated region fallthrough
CT: control target
= control target key end

     0   :  { %s266_s0 = inlined_call_operand.vmem [shape: bf16[256,128], index: 0, kind: input, shape index: {}]   ;;  %s267_s1 = inlined_call_operand.vmem [shape: bf16[2,256], index: 1, kind: input, shape index: {}]   ;;  %s268_s2 = inlined_call_operand.<no memory space> [shape: bf16[], index: 2, kind: input, shape index: {}]   ;;  %s269_s3 = inlined_call_operand.<no memory space> [shape: f32[], index: 3, kind: input, shape index: {}]   ;;  %s270_s4 = inlined_call_operand.vmem [shape: f32[16,128], index: 4, kind: output, shape index: {}]  }
   0x1   :  { %v9_v0 = vstv %s268_s2  ;;  %v14_v1 = vstv %s269_s3 }
   0x2   :  { %v10_v2 = vunpack.i.l.bf16 %v9_v0 }
   0x3   :  { %v70_v3 = vld [vmem:[%s266_s0 + $0x40] sm:$0xff]  ;;  %v71_v5 = vld [vmem:[%s266_s0 + $0x48] sm:$0xff]  ;;  %v25_v6 = vlaneseq  ;;  %58 = vst [vmem:[#allocation8] sm:$0x1] %v14_v1  ;;  %v72_v10 = vld [vmem:[%s266_s0 + $0x50] sm:$0xff]  ;;  %v174_v19 = vmov 0.0  }
   0x4   :  { %v62_v4 = vld [vmem:[%s266_s0] sm:$0xff]  ;;  %v149_v7 = vpack.c.bf16 %v10_v2, %v10_v2  ;;  %151 = vmatprep.subr.bf16.mxu0 %v70_v3  ;;  %v63_v9 = vld [vmem:[%s266_s0 + $0x8] sm:$0xff]  ;;  %v64_v15 = vld [vmem:[%s266_s0 + $0x10] sm:$0xff] }
   0x5   :  { %152 = vmatpush3.bf16.msra.mxu0 %v62_v4  ;;  %v26_v8 = vshrl.u32 %v25_v6, 7  ;;  %v22_v11 = vld [vmem:[%s267_s1] sm:$0x1]  ;;  %v142_v12 = vld [vmem:[%s267_s1 + $0x1] sm:$0x1]  ;;  %v73_v16 = vld [vmem:[%s266_s0 + $0x58] sm:$0xff] }
   0x6   :  { %153 = vmatprep.subr.bf16.mxu0 %v71_v5  ;;  %v23_v13 = vunpack.c.l.bf16 %v22_v11  ;;  %v38_v14 = vunpack.c.l.bf16 %v142_v12  ;;  %v65_v22 = vld [vmem:[%s266_s0 + $0x18] sm:$0xff]  ;;  %v74_v23 = vld [vmem:[%s266_s0 + $0x60] sm:$0xff]  ;;  %v75_v25 = vld [vmem:[%s266_s0 + $0x68] sm:$0xff] }
   0x7   :  { %vm28_vm0 = vcmp.lt.s32.totalorder %v26_v8, 2  ;;  %v66_v24 = vld [vmem:[%s266_s0 + $0x20] sm:$0xff]  ;;  %v67_v27 = vld [vmem:[%s266_s0 + $0x28] sm:$0xff]  ;;  %v76_v29 = vld [vmem:[%s266_s0 + $0x70] sm:$0xff] }
   0x8   :  { %v29_v17 = vsel %vm28_vm0, %v23_v13, %v10_v2  ;;  %v44_v18 = vsel %vm28_vm0, %v38_v14, %v10_v2  ;;  %v68_v30 = vld [vmem:[%s266_s0 + $0x30] sm:$0xff]  ;;  %v77_v31 = vld [vmem:[%s266_s0 + $0x78] sm:$0xff] }
   0x9   :  { %154 = vmatpush3.bf16.msra.mxu0 %v63_v9  ;;  %v30_v20 = vpack.c.bf16 %v174_v19, %v29_v17  ;;  %v46_v21 = vpack.c.bf16 %v174_v19, %v44_v18  ;;  %v69_v32 = vld [vmem:[%s266_s0 + $0x38] sm:$0xff] }
   0xa   :  { %155 = vmatprep.subr.bf16.mxu0 %v72_v10  ;;  %v143_v35 = vld [vmem:[#allocation8] ss:$0 sm:$0xff] }
   0xb   :  { %32 = vst [vmem:[#allocation7] sm:$0xf] %v30_v20  ;;  %48 = vst [vmem:[#allocation7 + $0x4] sm:$0xf] %v46_v21 }
   0xd   :  { %156 = vmatpush3.bf16.msra.mxu0 %v64_v15 }
   0xe   :  { %157 = vmatprep.subr.bf16.mxu0 %v73_v16 }
  0x11   :  { %158 = vmatpush3.bf16.msra.mxu0 %v65_v22 }
  0x12   :  { %159 = vmatprep.subr.bf16.mxu0 %v74_v23  ;;  %v60_v26 = vld [vmem:[#allocation7] sm:$0xff] }
  0x13   :  { %v145_v28 = vcombine.high %v60_v26, %v149_v7  ;;  %v144_v33 = vcombine.low %v60_v26, %v149_v7 }
  0x15   :  { %160 = vmatpush3.bf16.msra.mxu0 %v66_v24  ;;  %127 = vmatprep.mubr.bf16.mxu0 %v145_v28 }
  0x16   :  { %161 = vmatprep.subr.bf16.mxu0 %v75_v25 }
  0x19   :  { %162 = vmatpush3.bf16.msra.mxu0 %v67_v27 }
  0x1a   :  { %163 = vmatprep.subr.bf16.mxu0 %v76_v29 }
  0x1d   :  { %164 = vmatpush3.bf16.msra.mxu0 %v68_v30 }
  0x1e   :  { %165 = vmatprep.subr.bf16.mxu0 %v77_v31 }
  0x21   :  { %166 = vmatpush3.bf16.msra.mxu0 %v69_v32 }
  0x24   :  { %128 = vmatmul.mubr.bf16.vlgmr.msra.gmra.mrb[0].mxu0 %v144_v33 }
  0xf7   :  { %v167_v34 = vpop.f32.mrb[0].mxu0 }
  0xf8   :  { %v168_v36 = vpop.f32.mrb[1].mxu0 }
  0xf9   :  { %v169_v37 = vadd.f32 %v168_v36, %v167_v34  ;;  %v170_v38 = vpop.f32.mrb[2].mxu0 }
  0xfa   :  { %v171_v39 = vpop.f32.mrb[3].mxu0 }
  0xfb   :  { %v130_v40 = vadd.f32 %v169_v37, %v143_v35  ;;  %v172_v41 = vadd.f32 %v171_v39, %v170_v38 }
  0xfd   :  { %136 = vst [vmem:[%s270_s4] sm:$0xff] %v130_v40  ;;  %v133_v42 = vadd.f32 %v172_v41, %v143_v35 }
  0xff   :  { %137 = vst [vmem:[%s270_s4 + $0x8] sm:$0xff] %v133_v42 }

// kernel: _lambda_.8
= control target key start
LH: loop header
LB: loop body
LE: loop exit
PB: predicated region body
PF: predicated region fallthrough
CT: control target
= control target key end

     0   :  { %s1516_s17 = smov 0   ;;  %s1518_s18 = smov 0   ;;  %s1719_s0 = inlined_call_operand.vmem [shape: bf16[4,12,128], index: 0, kind: input, shape index: {}]   ;;  %s1720_s1 = inlined_call_operand.vmem [shape: f32[1,128], index: 1, kind: input, shape index: {}]   ;;  %s1721_s2 = inlined_call_operand.vmem [shape: bf16[2,81,12], index: 2, kind: input, shape index: {}]   ;;  %s1722_s3 = inlined_call_operand.<no memory space> [shape: bf16[], index: 3, kind: input, shape index: {}]   ;;  %s1723_s4 = inlined_call_operand.vmem [shape: bf16[2,72,128], index: 4, kind: output, shape index: {}]  }
   0x1   :  { %v9_v0 = vstv %s1722_s3  ;;  %s1520_s19 = smov 0  }
   0x2   :  { %v1514_v1 = vunpack.i.l.bf16 %v9_v0 }
   0x3 LB: > { %s31_s3 = sadd.s32 1, %s1478_s18  ;;  %p1205_p0 = scmp.ge.s32.totalorder %s1482_s19, 1  ;;  %s1482_s19 = sphi %s1520_s19, %s19_s19   ;;  %s1478_s18 = sphi %s1518_s18, %s1725_s18   ;;  %s1474_s17 = sphi %s1516_s17, %s1724_s17  }
   0x4   : > { %p33_p1 = scmp.ge.s32.totalorder %s31_s3, 2  ;;  %p174_p2 = scmp.lt.s32.totalorder %s1482_s19, 3 }
   0x6   : > { %s1727_s3 = smov (%p33_p1, %s31_s3), 0  ;;  %p175_p3 = pnand %p1205_p0, %p174_p2 }
   0x8   : > { %178 = sbr.rel (%p175_p3) target bundleno = 339 (0x153), region = 32 }
   0xf   : > { %vm535_vm0 = vcmask 1045504   ;;  %v1484_v2 = vmov 0.0   ;;  %v1444_v3 = vld [vmem:[%s1719_s0 + $0x8] sm:$0x3f]   ;;  %v236_v4 = vlaneseq  ;;  %v1445_v5 = vld [vmem:[%s1719_s0] sm:$0x3f]  }
  0x10   : > { %1328 = vmatprep.subr.bf16.mxu0 %v1484_v2  ;;  %1350 = vmatprep.subr.bf16.mxu1 %v1484_v2  ;;  %p208_p4 = scmp.lt.s32.totalorder %s1474_s17, 1  ;;  %v537_v6 = vsel %vm535_vm0, %v1444_v3, 0  ;;  %vm1485_vm1 = vmmov 0   ;;  %v629_v7 = vsel %vm535_vm0, %v1445_v5, 0  ;;  %v1449_v44 = vld [vmem:[%s1719_s0 + $0x18] sm:$0x3f]  }
  0x11   : > { %1352 = vmatprep.mubr.msk.bf16.mxu1 %vm1485_vm1, %v1484_v2  ;;  %1330 = vmatprep.mubr.msk.bf16.mxu0 %vm1485_vm1, %v1484_v2  ;;  %v420_v8 = vshrl.u32 %v236_v4, 7  ;;  %v237_v9 = vand.u32 127, %v236_v4  ;;  %vm519_vm4 = vcmask 97280   ;;  %v922_v53 = vsel %vm535_vm0, %v1449_v44, 0  ;;  %v1448_v58 = vld [vmem:[%s1719_s0 + $0x10] sm:$0x3f]  }
  0x12   : > { %1329 = vmatpush3.bf16.msra.mxu0 %v537_v6  ;;  %s1729_s17 = smov (!%p208_p4, %s1474_s17), 1  ;;  %1351 = vmatpush3.bf16.msra.mxu1 %v629_v7  ;;  %vm474_vm5 = vsmask.f32 7424  ;;  %v801_v3 = vsel %vm535_vm0, %v1448_v58, 0  ;;  %vm891_vm6 = vcmask 1046528  }
  0x13   : > { %1372 = vmatprep.subr.bf16.mxu0 %v1484_v2  ;;  %s1416_s24 = smul.u32 44, %s1729_s17  ;;  %1394 = vmatprep.subr.bf16.mxu1 %v1484_v2  ;;  %v421_v10 = vadd.s32 80, %v420_v8  ;;  %vm239_vm2 = vcmp.lt.s32.totalorder %v237_v9, 12 }
  0x14   : > { %s1417_s8 = smul.u32 36, %s1729_s17 }
  0x15   : > { %s212_s27 = scalar_lea.vmem %s1721_s2, %s1416_s24  ;;  %vm422_vm3 = vcmp.lt.s32.totalorder %v421_v10, 81 }
  0x16   : > { %v228_v11 = vld [vmem:[%s212_s27] sm:$0xff]   ;;  %v1209_v12 = vld [vmem:[%s212_s27 + $0x8] sm:$0xff]   ;;  %v1211_v13 = vld [vmem:[%s212_s27 + $0x10] sm:$0xff]   ;;  %s1690_s11 = scalar_lea.vmem %s1723_s4, %s1417_s8 }
  0x17   : > { %v229_v14 = vunpack.c.l.bf16 %v228_v11  ;;  %v246_v15 = vunpack.c.h.bf16 %v228_v11  ;;  %v264_v16 = vunpack.c.l.bf16 %v1209_v12  ;;  %v282_v17 = vunpack.c.h.bf16 %v1209_v12  ;;  %v1213_v18 = vld [vmem:[%s212_s27 + $0x18] sm:$0xff]   ;;  %v1215_v31 = vld [vmem:[%s212_s27 + $0x20] sm:$0xff]   ;;  %v1217_v32 = vld [vmem:[%s212_s27 + $0x28] sm:$0xf] }
  0x18   : > { %v300_v19 = vunpack.c.l.bf16 %v1211_v13  ;;  %v318_v20 = vunpack.c.h.bf16 %v1211_v13  ;;  %v336_v21 = vunpack.c.l.bf16 %v1213_v18  ;;  %v354_v22 = vunpack.c.h.bf16 %v1213_v18 }
  0x19   : > { %v240_v23 = vsel %vm239_vm2, %v229_v14, %v1514_v1  ;;  %v257_v24 = vsel %vm239_vm2, %v246_v15, %v1514_v1  ;;  %v275_v25 = vsel %vm239_vm2, %v264_v16, %v1514_v1  ;;  %v293_v26 = vsel %vm239_vm2, %v282_v17, %v1514_v1 }
  0x1a   : > { %v241_v27 = vpack.c.bf16 %v1484_v2, %v240_v23  ;;  %v259_v28 = vpack.c.bf16 %v1484_v2, %v257_v24  ;;  %v277_v29 = vpack.c.bf16 %v1484_v2, %v275_v25  ;;  %v295_v30 = vpack.c.bf16 %v1484_v2, %v293_v26 }
  0x1b   : > { %v311_v33 = vsel %vm239_vm2, %v300_v19, %v1514_v1  ;;  %v329_v34 = vsel %vm239_vm2, %v318_v20, %v1514_v1  ;;  %v347_v35 = vsel %vm239_vm2, %v336_v21, %v1514_v1  ;;  %v365_v36 = vsel %vm239_vm2, %v354_v22, %v1514_v1 }
  0x1c   : > { %243 = vst [vmem:[#allocation7] sm:$0xf] %v241_v27  ;;  %261 = vst [vmem:[#allocation7 + $0x4] sm:$0xf] %v259_v28  ;;  %v313_v37 = vpack.c.bf16 %v1484_v2, %v311_v33  ;;  %v331_v38 = vpack.c.bf16 %v1484_v2, %v329_v34  ;;  %v349_v39 = vpack.c.bf16 %v1484_v2, %v347_v35  ;;  %v372_v41 = vunpack.c.l.bf16 %v1215_v31 }
  0x1d   : > { %279 = vst [vmem:[#allocation7 + $0x8] sm:$0xf] %v277_v29  ;;  %297 = vst [vmem:[#allocation7 + $0xc] sm:$0xf] %v295_v30  ;;  %v367_v40 = vpack.c.bf16 %v1484_v2, %v365_v36  ;;  %v390_v42 = vunpack.c.h.bf16 %v1215_v31  ;;  %v417_v43 = vunpack.c.l.bf16 %v1217_v32 }
  0x1e   : > { %315 = vst [vmem:[#allocation7 + $0x10] sm:$0xf] %v313_v37  ;;  %333 = vst [vmem:[#allocation7 + $0x14] sm:$0xf] %v331_v38  ;;  %v383_v45 = vsel %vm239_vm2, %v372_v41, %v1514_v1 }
  0x1f   : > { %351 = vst [vmem:[#allocation7 + $0x18] sm:$0xf] %v349_v39  ;;  %369 = vst [vmem:[#allocation7 + $0x1c] sm:$0xf] %v367_v40  ;;  %v401_v46 = vsel %vm239_vm2, %v390_v42, %v1514_v1  ;;  %v423_v47 = vsel %vm422_vm3, %v417_v43, %v1514_v1  ;;  %v385_v48 = vpack.c.bf16 %v1484_v2, %v383_v45 }
  0x20   : > { %v403_v49 = vpack.c.bf16 %v1484_v2, %v401_v46  ;;  %v428_v50 = vsel %vm239_vm2, %v423_v47, %v1514_v1 }
  0x21   : > { %v430_v51 = vpack.c.bf16 %v1484_v2, %v428_v50  ;;  %387 = vst [vmem:[#allocation7 + $0x20] sm:$0xf] %v385_v48 }
  0x22   : > { %405 = vst [vmem:[#allocation7 + $0x24] sm:$0xf] %v403_v49 }
  0x23   : > { %v1446_v52 = vld [vmem:[#allocation7] sm:$0xff]   ;;  %432 = vst [vmem:[#allocation7 + $0x28] sm:$0xf] %v430_v51 }
  0x24   : > { %v1447_v54 = vld [vmem:[#allocation7 + $0x8] sm:$0xff]   ;;  %1353 = vmatmul.mubr.msk.bf16.vlgmr.msra.gmra.mrb[0].mxu1 %vm519_vm4, %v1446_v52  ;;  %v476_v55 = vshrl.u32 %v1446_v52, 16  ;;  %v478_v56 = vshll.u32 %v1446_v52, 16  ;;  %v703_v21 = vld [vmem:[#allocation7 + $0x4] sm:$0xf] }
  0x25   : > { %v483_v57 = vshll.u32 %v1447_v54, 16  ;;  %1395 = vmatpush3.bf16.msra.mxu1 %v922_v53  ;;  %1356 = vmatprep.mubr.msk.bf16.mxu1 %vm1485_vm1, %v1484_v2  ;;  %v1450_v59 = vld [vmem:[#allocation7 + $0x10] sm:$0xff]   ;;  %v487_v63 = vshrl.u32 %v1447_v54, 16  ;;  %v704_v22 = vld [vmem:[#allocation7 + $0x8] sm:$0xf] }
  0x26   : > { %v480_v60 = vrot.slane %v478_v56, 1  ;;  %v491_v0 = vshll.u32 %v1450_v59, 16  ;;  %v1451_v7 = vld [vmem:[#allocation7 + $0x18] sm:$0xff]   ;;  %v495_v9 = vshrl.u32 %v1450_v59, 16  ;;  %v884_v23 = vld [vmem:[#allocation7 + $0x4] sm:$0xe]  ;;  %v1240_v25 = vcombine.low %v703_v21, %v704_v22 }
  0x27   : > { %v485_v61 = vrot.slane %v483_v57, 1  ;;  %v499_v10 = vshll.u32 %v1451_v7, 16  ;;  %v503_v17 = vshrl.u32 %v1451_v7, 16  ;;  %v1455_v27 = vld [vmem:[#allocation7 + $0xc] sm:$0xff]   ;;  %v1253_v28 = vcombine.low %v884_v23, %v704_v22  ;;  %v1457_v38 = vld [vmem:[#allocation7 + $0x14] sm:$0xff]  }
  0x28   : > { %v481_v62 = vor.u32 %v480_v60, %v476_v55  ;;  %v493_v6 = vrot.slane %v491_v0, 1  ;;  %v442_v11 = vld [vmem:[#allocation7 + $0x20] sm:$0xf]  ;;  %v744_v30 = vshll.u32 %v1240_v25, 16  ;;  %v893_v32 = vrot.slane %v1455_v27, 1 }
  0x29   : > { %v489_v5 = vor.u32 %v487_v63, %v485_v61  ;;  %v445_v12 = vld [vmem:[#allocation7 + $0x24] sm:$0x1]  ;;  %v501_v14 = vrot.slane %v499_v10, 1  ;;  %v1231_v26 = vcombine.low %v442_v11, %v442_v11  ;;  %v892_v31 = vrot.slane %v1253_v28, 1  ;;  %v1458_v46 = vld [vmem:[#allocation7 + $0x1c] sm:$0xff]  }
  0x2a   : > { %v486_v4 = vsel %vm474_vm5, %v481_v62, %v485_v61  ;;  %v497_v13 = vor.u32 %v495_v9, %v493_v6  ;;  %v1224_v15 = vcombine.low %v442_v11, %v445_v12  ;;  %v742_v34 = vshrl.u32 %v1240_v25, 16 }
  0x2b   : > { %1331 = vmatmul.mubr.msk.bf16.vlgmr.msra.gmra.mrb[0].mxu0 %vm519_vm4, %v486_v4  ;;  %v494_v8 = vsel %vm474_vm5, %v489_v5, %v493_v6  ;;  %v505_v19 = vor.u32 %v503_v17, %v501_v14  ;;  %v746_v35 = vrot.slane %v744_v30, 1  ;;  %v749_v36 = vshll.u32 %v1455_v27, 16 }
  0x2c   : > { %1373 = vmatpush3.bf16.msra.mxu0 %v801_v3  ;;  %1334 = vmatprep.mubr.msk.bf16.mxu0 %vm1485_vm1, %v1484_v2  ;;  %v502_v16 = vsel %vm474_vm5, %v497_v13, %v501_v14  ;;  %v507_v18 = vshll.u32 %v1224_v15, 16  ;;  %v511_v29 = vshrl.u32 %v1224_v15, 16  ;;  %v894_v37 = vsel %vm891_vm6, %v892_v31, %v893_v32 }
  0x2d   : > { %1357 = vmatmul.mubr.msk.bf16.gmra.mrb[4].mxu1 %vm519_vm4, %v1447_v54  ;;  %v747_v39 = vor.u32 %v746_v35, %v742_v34  ;;  %v751_v40 = vrot.slane %v749_v36, 1  ;;  %v895_v41 = vrot.slane %v1457_v38, 1  ;;  %v753_v43 = vshrl.u32 %v1455_v27, 16  ;;  %v1459_v54 = vld [vmem:[#allocation7 + $0x24] sm:$0x1f]  }
  0x2e   : > { %1360 = vmatprep.mubr.msk.bf16.mxu1 %vm1485_vm1, %v1484_v2  ;;  %v509_v20 = vrot.slane %v507_v18, 1  ;;  %v757_v44 = vshll.u32 %v1457_v38, 16  ;;  %v897_v49 = vrot.slane %v1458_v46, 1  ;;  %v761_v51 = vshrl.u32 %v1457_v38, 16 }
  0x2f   : > { %v752_v42 = vsel %vm474_vm5, %v747_v39, %v751_v40  ;;  %v896_v45 = vsel %vm891_vm6, %v893_v32, %v895_v41  ;;  %v755_v47 = vor.u32 %v753_v43, %v751_v40  ;;  %v765_v52 = vshll.u32 %v1458_v46, 16 }
  0x30   : > { %v510_v24 = vsel %vm474_vm5, %v505_v19, %v509_v20  ;;  %v513_v33 = vor.u32 %v511_v29, %v509_v20  ;;  %v759_v48 = vrot.slane %v757_v44, 1  ;;  %v898_v53 = vsel %vm891_vm6, %v895_v41, %v897_v49 }
  0x31   : > { %v767_v56 = vrot.slane %v765_v52, 1  ;;  %v899_v57 = vrot.slane %v1459_v54, 1  ;;  %v773_v60 = vshll.u32 %v1459_v54, 16  ;;  %v777_v3 = vshrl.u32 %v1459_v54, 16 }
  0x32   : > { %v760_v50 = vsel %vm474_vm5, %v755_v47, %v759_v48  ;;  %v763_v55 = vor.u32 %v761_v51, %v759_v48 }
  0x33   : > { %1335 = vmatmul.mubr.msk.bf16.gmra.mrb[4].mxu0 %vm519_vm4, %v494_v8  ;;  %v900_v61 = vsel %vm891_vm6, %v897_v49, %v899_v57  ;;  %v775_v63 = vrot.slane %v773_v60, 1  ;;  %v1682_v60 = vld [vmem:[%s1720_s1] ss:$0 sm:$0xff] }
  0x34   : > { %1338 = vmatprep.mubr.msk.bf16.mxu0 %vm1485_vm1, %v1484_v2  ;;  %v768_v58 = vsel %vm474_vm5, %v763_v55, %v767_v56 }
  0x35   : > { %1361 = vmatmul.mubr.msk.bf16.gmra.mrb[8].mxu1 %vm519_vm4, %v1450_v59  ;;  %v769_v59 = vshrl.u32 %v1458_v46, 16  ;;  %v779_v4 = vor.u32 %v777_v3, %v775_v63 }
  0x36   : > { %1364 = vmatprep.mubr.msk.bf16.mxu1 %vm1485_vm1, %v1484_v2 }
  0x37   : > { %v771_v62 = vor.u32 %v769_v59, %v767_v56 }
  0x39   : > { %v776_v0 = vsel %vm474_vm5, %v771_v62, %v775_v63 }
  0x3b   : > { %1339 = vmatmul.mubr.msk.bf16.gmra.mrb[8].mxu0 %vm519_vm4, %v502_v16 }
  0x3c   : > { %1342 = vmatprep.mubr.msk.bf16.mxu0 %vm1485_vm1, %v1484_v2 }
  0x3d   : > { %1365 = vmatmul.mubr.msk.bf16.gmra.mrb[12].mxu1 %vm519_vm4, %v1451_v7 }
  0x3e   : > { %1368 = vmatprep.mubr.msk.bf16.mxu1 %vm1485_vm1, %v1484_v2 }
  0x43   : > { %1343 = vmatmul.mubr.msk.bf16.gmra.mrb[12].mxu0 %vm519_vm4, %v510_v24 }
  0x44   : > { %1346 = vmatprep.mubr.msk.bf16.mxu0 %vm1485_vm1, %v1484_v2 }
  0x45   : > { %1369 = vmatmul.mubr.msk.bf16.gmra.mrb[16].mxu1 %vm519_vm4, %v1231_v26 }
  0x46   : > { %1396 = vmatprep.mubr.msk.bf16.mxu1 %vm1485_vm1, %v1484_v2 }
  0x4b   : > { %1347 = vmatmul.mubr.msk.bf16.gmra.mrb[16].mxu0 %vm519_vm4, %v513_v33 }
  0x4c   : > { %1374 = vmatprep.mubr.msk.bf16.mxu0 %vm1485_vm1, %v1484_v2 }
  0x4d   : > { %1397 = vmatmul.mubr.msk.bf16.vlgmr.msra.gmra.mrb[20].mxu1 %vm519_vm4, %v894_v37 }
  0x4e   : > { %1400 = vmatprep.mubr.msk.bf16.mxu1 %vm1485_vm1, %v1484_v2 }
  0x53   : > { %1375 = vmatmul.mubr.msk.bf16.vlgmr.msra.gmra.mrb[20].mxu0 %vm519_vm4, %v752_v42 }
  0x54   : > { %1378 = vmatprep.mubr.msk.bf16.mxu0 %vm1485_vm1, %v1484_v2 }
  0x55   : > { %1401 = vmatmul.mubr.msk.bf16.gmra.mrb[24].mxu1 %vm519_vm4, %v896_v45 }
  0x56   : > { %1404 = vmatprep.mubr.msk.bf16.mxu1 %vm1485_vm1, %v1484_v2 }
  0x5b   : > { %1379 = vmatmul.mubr.msk.bf16.gmra.mrb[24].mxu0 %vm519_vm4, %v760_v50 }
  0x5c   : > { %1382 = vmatprep.mubr.msk.bf16.mxu0 %vm1485_vm1, %v1484_v2 }
  0x5d   : > { %1405 = vmatmul.mubr.msk.bf16.gmra.mrb[28].mxu1 %vm519_vm4, %v898_v53 }
  0x5e   : > { %1408 = vmatprep.mubr.msk.bf16.mxu1 %vm1485_vm1, %v1484_v2 }
  0x63   : > { %1383 = vmatmul.mubr.msk.bf16.gmra.mrb[28].mxu0 %vm519_vm4, %v768_v58 }
  0x64   : > { %1386 = vmatprep.mubr.msk.bf16.mxu0 %vm1485_vm1, %v1484_v2 }
  0x65   : > { %1409 = vmatmul.mubr.msk.bf16.gmra.mrb[32].mxu1 %vm519_vm4, %v900_v61 }
  0x66   : > { %1412 = vmatprep.mubr.msk.bf16.mxu1 %vm1485_vm1, %v1484_v2 }
  0x6b   : > { %1387 = vmatmul.mubr.msk.bf16.gmra.mrb[32].mxu0 %vm519_vm4, %v776_v0 }
  0x6c   : > { %1390 = vmatprep.mubr.msk.bf16.mxu0 %vm1485_vm1, %v1484_v2 }
  0x6d   : > { %1413 = vmatmul.mubr.msk.bf16.gmra.mrb[36].mxu1 %vm519_vm4, %v899_v57 }
  0x73   : > { %1391 = vmatmul.mubr.msk.bf16.gmra.mrb[36].mxu0 %vm519_vm4, %v779_v4 }
  0xf7   : > { %v665_v5 = vpop.f32.mrb[0].mxu1 }
  0xf8   : > { %v1354_v6 = vpop.f32.mrb[1].mxu1 }
  0xf9   : > { %v668_v7 = vpop.f32.mrb[2].mxu1 }
  0xfa   : > { %v1355_v8 = vpop.f32.mrb[3].mxu1 }
  0xfe   : > { %v573_v9 = vpop.f32.mrb[0].mxu0 }
  0xff   : > { %v666_v10 = vadd.f32 %v665_v5, %v573_v9  ;;  %v1332_v11 = vpop.f32.mrb[1].mxu0 }
 0x100   : > { %v576_v12 = vpop.f32.mrb[2].mxu0  ;;  %v673_v13 = vpop.f32.mrb[4].mxu1 }
 0x101   : > { %v669_v14 = vadd.f32 %v668_v7, %v576_v12  ;;  %v1333_v15 = vpop.f32.mrb[3].mxu0  ;;  %v1358_v16 = vpop.f32.mrb[5].mxu1 }
 0x102   : > { %v676_v17 = vpop.f32.mrb[6].mxu1 }
 0x103   : > { %v1359_v18 = vpop.f32.mrb[7].mxu1 }
 0x106   : > { %v581_v2 = vpop.f32.mrb[4].mxu0 }
 0x107   : > { %v674_v19 = vadd.f32 %v673_v13, %v581_v2  ;;  %v1336_v20 = vpop.f32.mrb[5].mxu0 }
 0x108   : > { %v584_v21 = vpop.f32.mrb[6].mxu0  ;;  %v681_v22 = vpop.f32.mrb[8].mxu1 }
 0x109   : > { %v1667_v23 = vadd.f32 %v676_v17, %v584_v21  ;;  %v1337_v24 = vpop.f32.mrb[7].mxu0  ;;  %v1362_v25 = vpop.f32.mrb[9].mxu1 }
 0x10a   : > { %v684_v26 = vpop.f32.mrb[10].mxu1 }
 0x10b   : > { %v1363_v27 = vpop.f32.mrb[11].mxu1 }
 0x10e   : > { %v589_v28 = vpop.f32.mrb[8].mxu0 }
 0x10f   : > { %v1669_v29 = vadd.f32 %v681_v22, %v589_v28  ;;  %v1340_v30 = vpop.f32.mrb[9].mxu0 }
 0x110   : > { %v592_v31 = vpop.f32.mrb[10].mxu0  ;;  %v689_v32 = vpop.f32.mrb[12].mxu1 }
 0x111   : > { %v1671_v33 = vadd.f32 %v684_v26, %v592_v31  ;;  %v1341_v34 = vpop.f32.mrb[11].mxu0  ;;  %v1366_v35 = vpop.f32.mrb[13].mxu1 }
 0x112   : > { %v692_v36 = vpop.f32.mrb[14].mxu1 }
 0x113   : > { %v1367_v37 = vpop.f32.mrb[15].mxu1 }
 0x116   : > { %v597_v38 = vpop.f32.mrb[12].mxu0 }
 0x117   : > { %v1673_v39 = vadd.f32 %v689_v32, %v597_v38  ;;  %v1344_v40 = vpop.f32.mrb[13].mxu0 }
 0x118   : > { %v600_v41 = vpop.f32.mrb[14].mxu0  ;;  %v697_v42 = vpop.f32.mrb[16].mxu1 }
 0x119   : > { %v1675_v43 = vadd.f32 %v692_v36, %v600_v41  ;;  %v1345_v44 = vpop.f32.mrb[15].mxu0  ;;  %v1370_v45 = vpop.f32.mrb[17].mxu1 }
 0x11a   : > { %v700_v46 = vpop.f32.mrb[18].mxu1 }
 0x11b   : > { %v1371_v47 = vpop.f32.mrb[19].mxu1 }
 0x11e   : > { %v605_v48 = vpop.f32.mrb[16].mxu0 }
 0x11f   : > { %v1677_v49 = vadd.f32 %v697_v42, %v605_v48  ;;  %v1348_v50 = vpop.f32.mrb[17].mxu0 }
 0x120   : > { %v608_v51 = vpop.f32.mrb[18].mxu0  ;;  %v958_v52 = vpop.f32.mrb[20].mxu1 }
 0x121   : > { %v1349_v53 = vpop.f32.mrb[19].mxu0  ;;  %v1398_v54 = vpop.f32.mrb[21].mxu1 }
 0x122   : > { %v961_v55 = vpop.f32.mrb[22].mxu1 }
 0x123   : > { %v1399_v56 = vpop.f32.mrb[23].mxu1 }
 0x126   : > { %v837_v57 = vpop.f32.mrb[20].mxu0 }
 0x127   : > { %v875_v58 = vadd.f32 %v837_v57, %v666_v10  ;;  %v1376_v59 = vpop.f32.mrb[21].mxu0 }
 0x128   : > { %v840_v61 = vpop.f32.mrb[22].mxu0  ;;  %v966_v62 = vpop.f32.mrb[24].mxu1 }
 0x129   : > { %v996_v63 = vadd.f32 %v958_v52, %v875_v58  ;;  %v876_v0 = vadd.f32 %v840_v61, %v669_v14  ;;  %v1377_v3 = vpop.f32.mrb[23].mxu0  ;;  %v1402_v4 = vpop.f32.mrb[25].mxu1 }
 0x12a   : > { %v969_v5 = vpop.f32.mrb[26].mxu1 }
 0x12b   : > { %v1012_v6 = vadd.f32 %v1682_v60, %v996_v63  ;;  %v997_v7 = vadd.f32 %v961_v55, %v876_v0  ;;  %v1403_v8 = vpop.f32.mrb[27].mxu1 }
 0x12d   : > { %v1030_v9 = vmul.f32 0.01, %v1012_v6  ;;  %v1013_v10 = vadd.f32 %v1682_v60, %v997_v7  ;;  %vm1021_vm7 = vcmp.ge.f32.partialorder %v1012_v6, 0.0 }
 0x12e   : > { %v845_v11 = vpop.f32.mrb[24].mxu0 }
 0x12f   : > { %vm1022_vm8 = vcmp.ge.f32.partialorder %v1013_v10, 0.0  ;;  %v1031_v12 = vmul.f32 0.01, %v1013_v10  ;;  %v877_v13 = vadd.f32 %v845_v11, %v674_v19  ;;  %v1380_v15 = vpop.f32.mrb[25].mxu0  ;;  %v1039_v14 = vsel %vm1021_vm7, %v1012_v6, %v1030_v9 }
 0x130   : > { %v848_v16 = vpop.f32.mrb[26].mxu0  ;;  %v974_v17 = vpop.f32.mrb[28].mxu1 }
 0x131   : > { %v1040_v18 = vsel %vm1022_vm8, %v1013_v10, %v1031_v12  ;;  %v998_v2 = vadd.f32 %v966_v62, %v877_v13  ;;  %v878_v20 = vadd.f32 %v848_v16, %v1667_v23  ;;  %v1381_v21 = vpop.f32.mrb[27].mxu0  ;;  %v1406_v22 = vpop.f32.mrb[29].mxu1 }
 0x132   : > { %v1284_v24 = vpack.c.bf16 %v1040_v18, %v1039_v14  ;;  %v977_v25 = vpop.f32.mrb[30].mxu1 }
 0x133   : > { %v1014_v19 = vadd.f32 %v1682_v60, %v998_v2  ;;  %v999_v26 = vadd.f32 %v969_v5, %v878_v20  ;;  %v1407_v27 = vpop.f32.mrb[31].mxu1 }
 0x134   : > { %1285 = vst [vmem:[%s1690_s11] sm:$0xff] %v1284_v24  }
 0x135   : > { %v1032_v28 = vmul.f32 0.01, %v1014_v19  ;;  %v1015_v30 = vadd.f32 %v1682_v60, %v999_v26  ;;  %vm1023_vm9 = vcmp.ge.f32.partialorder %v1014_v19, 0.0 }
 0x136   : > { %v853_v31 = vpop.f32.mrb[28].mxu0 }
 0x137   : > { %vm1024_vm10 = vcmp.ge.f32.partialorder %v1015_v30, 0.0  ;;  %v1033_v32 = vmul.f32 0.01, %v1015_v30  ;;  %v879_v34 = vadd.f32 %v853_v31, %v1669_v29  ;;  %v1384_v23 = vpop.f32.mrb[29].mxu0  ;;  %v1041_v37 = vsel %vm1023_vm9, %v1014_v19, %v1032_v28 }
 0x138   : > { %v856_v35 = vpop.f32.mrb[30].mxu0  ;;  %v982_v36 = vpop.f32.mrb[32].mxu1 }
 0x139   : > { %v1042_v38 = vsel %vm1024_vm10, %v1015_v30, %v1033_v32  ;;  %v1000_v40 = vadd.f32 %v974_v17, %v879_v34  ;;  %v880_v41 = vadd.f32 %v856_v35, %v1671_v33  ;;  %v1385_v42 = vpop.f32.mrb[31].mxu0  ;;  %v1410_v44 = vpop.f32.mrb[33].mxu1 }
 0x13a   : > { %v1289_v45 = vpack.c.bf16 %v1042_v38, %v1041_v37  ;;  %v985_v46 = vpop.f32.mrb[34].mxu1 }
 0x13b   : > { %v1016_v47 = vadd.f32 %v1682_v60, %v1000_v40  ;;  %v1001_v48 = vadd.f32 %v977_v25, %v880_v41  ;;  %v1411_v50 = vpop.f32.mrb[35].mxu1 }
 0x13c   : > { %1301 = vst [vmem:[%s1690_s11 + $0x8] sm:$0xff] %v1289_v45  }
 0x13d   : > { %v1034_v51 = vmul.f32 0.01, %v1016_v47  ;;  %v1017_v29 = vadd.f32 %v1682_v60, %v1001_v48  ;;  %vm1025_vm11 = vcmp.ge.f32.partialorder %v1016_v47, 0.0 }
 0x13e   : > { %v861_v52 = vpop.f32.mrb[32].mxu0 }
 0x13f   : > { %vm1026_vm12 = vcmp.ge.f32.partialorder %v1017_v29, 0.0  ;;  %v1035_v53 = vmul.f32 0.01, %v1017_v29  ;;  %v881_v54 = vadd.f32 %v861_v52, %v1673_v39  ;;  %v1388_v33 = vpop.f32.mrb[33].mxu0  ;;  %v1043_v57 = vsel %vm1025_vm11, %v1016_v47, %v1034_v51 }
 0x140   : > { %v864_v55 = vpop.f32.mrb[34].mxu0  ;;  %v990_v56 = vpop.f32.mrb[36].mxu1 }
 0x141   : > { %v1044_v58 = vsel %vm1026_vm12, %v1017_v29, %v1035_v53  ;;  %v1002_v59 = vadd.f32 %v982_v36, %v881_v54  ;;  %v882_v61 = vadd.f32 %v864_v55, %v1675_v43  ;;  %v1389_v62 = vpop.f32.mrb[35].mxu0  ;;  %v1414_v63 = vpop.f32.mrb[37].mxu1 }
 0x142   : > { %v1294_v0 = vpack.c.bf16 %v1044_v58, %v1043_v57  ;;  %v993_v3 = vpop.f32.mrb[38].mxu1 }
 0x143   : > { %v1018_v4 = vadd.f32 %v1682_v60, %v1002_v59  ;;  %v1003_v5 = vadd.f32 %v985_v46, %v882_v61  ;;  %v1415_v6 = vpop.f32.mrb[39].mxu1 }
 0x144   : > { %1302 = vst [vmem:[%s1690_s11 + $0x10] sm:$0xff] %v1294_v0  }
 0x145   : > { %v1036_v7 = vmul.f32 0.01, %v1018_v4  ;;  %v1019_v39 = vadd.f32 %v1682_v60, %v1003_v5  ;;  %vm1027_vm13 = vcmp.ge.f32.partialorder %v1018_v4, 0.0 }
 0x146   : > { %v869_v8 = vpop.f32.mrb[36].mxu0 }
 0x147   : > { %vm1028_vm14 = vcmp.ge.f32.partialorder %v1019_v39, 0.0  ;;  %v1037_v9 = vmul.f32 0.01, %v1019_v39  ;;  %v883_v43 = vadd.f32 %v869_v8, %v1677_v49  ;;  %v1392_v10 = vpop.f32.mrb[37].mxu0  ;;  %v1045_v12 = vsel %vm1027_vm13, %v1018_v4, %v1036_v7 }
 0x148   : > { %v872_v11 = vpop.f32.mrb[38].mxu0 }
 0x149   : > { %v1046_v13 = vsel %vm1028_vm14, %v1019_v39, %v1037_v9  ;;  %v1004_v15 = vadd.f32 %v990_v56, %v883_v43  ;;  %v1393_v16 = vpop.f32.mrb[39].mxu0 }
 0x14a   : > { %v1299_v17 = vpack.c.bf16 %v1046_v13, %v1045_v12 }
 0x14b   : > { %v1020_v14 = vadd.f32 %v1682_v60, %v1004_v15 }
 0x14c   : > { %1303 = vst [vmem:[%s1690_s11 + $0x18] sm:$0xff] %v1299_v17  }
 0x14d   : > { %vm1029_vm15 = vcmp.ge.f32.partialorder %v1020_v14, 0.0  ;;  %v1038_v18 = vmul.f32 0.01, %v1020_v14 }
 0x14f   : > { %v1047_v2 = vsel %vm1029_vm15, %v1020_v14, %v1038_v18 }
 0x150   : > { %v1280_v20 = vpack.c.bf16 %v1047_v2, %v1047_v2 }
 0x152   : > { %1093 = vst [vmem:[%s1690_s11 + $0x20] sm:$0xf] %v1280_v20 }
 0x153 PF: > { %s19_s19 = sadd.s32 1, %s1482_s19   ;;  %s1724_s17 = smov %s1478_s18 }
 0x154   : > { %p16_p5 = scmp.ge.s32.totalorder %s19_s19, 4   ;;  %s1725_s18 = smov %s1727_s3 }
 0x156   :  { %18 = sbr.rel (!%p16_p5) target bundleno = 3 (0x3), region = 91 }

// kernel: _lambda_.9
= control target key start
LH: loop header
LB: loop body
LE: loop exit
PB: predicated region body
PF: predicated region fallthrough
CT: control target
= control target key end

     0   :  { %s1274_s19 = smov 0   ;;  %s1276_s20 = smov 0   ;;  %s1411_s0 = inlined_call_operand.vmem [shape: bf16[9,16,128], index: 0, kind: input, shape index: {}]   ;;  %s1412_s1 = inlined_call_operand.vmem [shape: bf16[2,36,16], index: 1, kind: input, shape index: {}]   ;;  %s1413_s2 = inlined_call_operand.<no memory space> [shape: bf16[], index: 2, kind: input, shape index: {}]   ;;  %s1414_s3 = inlined_call_operand.<no memory space> [shape: f32[], index: 3, kind: input, shape index: {}]   ;;  %s1415_s4 = inlined_call_operand.vmem [shape: f32[2,24,128], index: 4, kind: output, shape index: {}]  }
   0x1   :  { %v9_v0 = vstv %s1413_s2  ;;  %v14_v1 = vstv %s1414_s3  ;;  %s1278_s21 = smov 0  }
   0x2   :  { %v1272_v2 = vunpack.i.l.bf16 %v9_v0 }
   0x3 LB: > { %s32_s2 = sadd.s32 1, %s1234_s20  ;;  %p1046_p0 = scmp.ge.s32.totalorder %s1238_s21, 1  ;;  %s1238_s21 = sphi %s1278_s21, %s20_s21   ;;  %s1234_s20 = sphi %s1276_s20, %s1417_s20   ;;  %s1230_s19 = sphi %s1274_s19, %s1416_s19  }
   0x4   : > { %p34_p1 = scmp.ge.s32.totalorder %s32_s2, 2  ;;  %p143_p2 = scmp.lt.s32.totalorder %s1238_s21, 3 }
   0x6   : > { %s1419_s2 = smov (%p34_p1, %s32_s2), 0  ;;  %p144_p3 = pnand %p1046_p0, %p143_p2 }
   0x8   : > { %147 = sbr.rel (%p144_p3) target bundleno = 297 (0x129), region = 28 }
   0xf   : > { %v1053_v3 = vld [vmem:[%s1411_s0 + $0x8] sm:$0xff]  ;;  %v292_v4 = vld [vmem:[%s1411_s0] sm:$0xff]  ;;  %p172_p4 = scmp.lt.s32.totalorder %s1230_s19, 1  ;;  %v197_v5 = vlaneseq  ;;  %287 = vst [vmem:[#allocation8] sm:$0x1] %v14_v1  ;;  %v1305_v6 = vld [vmem:[%s1411_s0 + $0x10] sm:$0xff] }
  0x10   : > { %1122 = vmatprep.subr.bf16.mxu0 %v1053_v3  ;;  %1128 = vmatprep.subr.bf16.mxu1 %v292_v4  ;;  %v1310_v7 = vld [vmem:[%s1411_s0 + $0x18] sm:$0xff]  ;;  %v1240_v23 = vmov 0.0   ;;  %vm306_vm2 = vsmask.f32 7424  ;;  %vm322_vm3 = vcmask 130048   ;;  %vm437_vm4 = vcmask 1046528  }
  0x11   : > { %1123 = vmatpush3.bf16.msra.mxu0 %v1053_v3  ;;  %1129 = vmatpush3.bf16.msra.mxu1 %v292_v4  ;;  %s1421_s19 = smov (!%p172_p4, %s1230_s19), 1  ;;  %v198_v8 = vand.u32 127, %v197_v5  ;;  %v273_v9 = vshrl.u32 %v197_v5, 7  ;;  %vm508_vm5 = vcmask 1044480   ;;  %v1074_v47 = vld [vmem:[%s1411_s0 + $0x28] sm:$0xff]  ;;  %vm727_vm8 = vcmask 1045504  }
  0x12   : > { %1134 = vmatprep.subr.bf16.mxu0 %v1305_v6  ;;  %1140 = vmatprep.subr.bf16.mxu1 %v1310_v7  ;;  %s1176_s6 = smul.u32 20, %s1421_s19  ;;  %vm575_vm6 = vsmask.f32 4352  ;;  %vm794_vm7 = vsmask.f32 5376 }
  0x13   : > { %v274_v10 = vadd.s32 32, %v273_v9  ;;  %vm200_vm0 = vcmp.lt.s32.totalorder %v198_v8, 16  ;;  %s1177_s23 = smul.u32 24, %s1421_s19 }
  0x14   : > { %s176_s9 = scalar_lea.vmem %s1412_s1, %s1176_s6 }
  0x15   : > { %v189_v11 = vld [vmem:[%s176_s9] sm:$0xff]   ;;  %v1050_v12 = vld [vmem:[%s176_s9 + $0x8] sm:$0xff]   ;;  %v1052_v13 = vld [vmem:[%s176_s9 + $0x10] sm:$0xf]  ;;  %vm275_vm1 = vcmp.lt.s32.totalorder %v274_v10, 36  ;;  %s188_s26 = scalar_lea.vmem %s1415_s4, %s1177_s23 }
  0x16   : > { %v190_v14 = vunpack.c.l.bf16 %v189_v11  ;;  %v207_v15 = vunpack.c.h.bf16 %v189_v11  ;;  %v225_v16 = vunpack.c.l.bf16 %v1050_v12  ;;  %v243_v17 = vunpack.c.h.bf16 %v1050_v12 }
  0x17   : > { %v270_v18 = vunpack.c.l.bf16 %v1052_v13 }
  0x18   : > { %v201_v19 = vsel %vm200_vm0, %v190_v14, %v1272_v2  ;;  %v218_v20 = vsel %vm200_vm0, %v207_v15, %v1272_v2  ;;  %v236_v21 = vsel %vm200_vm0, %v225_v16, %v1272_v2  ;;  %v254_v22 = vsel %vm200_vm0, %v243_v17, %v1272_v2  ;;  %v1070_v14 = vld [vmem:[%s1411_s0 + $0x20] sm:$0xff] }
  0x19   : > { %v202_v24 = vpack.c.bf16 %v1240_v23, %v201_v19  ;;  %v220_v25 = vpack.c.bf16 %v1240_v23, %v218_v20  ;;  %v238_v26 = vpack.c.bf16 %v1240_v23, %v236_v21  ;;  %v256_v27 = vpack.c.bf16 %v1240_v23, %v254_v22 }
  0x1a   : > { %v276_v28 = vsel %vm275_vm1, %v270_v18, %v1272_v2  ;;  %v1084_v18 = vld [vmem:[%s1411_s0 + $0x38] sm:$0xff] }
  0x1b   : > { %204 = vst [vmem:[#allocation7] sm:$0xf] %v202_v24  ;;  %222 = vst [vmem:[#allocation7 + $0x4] sm:$0xf] %v220_v25  ;;  %v281_v29 = vsel %vm200_vm0, %v276_v28, %v1272_v2 }
  0x1c   : > { %240 = vst [vmem:[#allocation7 + $0x8] sm:$0xf] %v238_v26  ;;  %258 = vst [vmem:[#allocation7 + $0xc] sm:$0xf] %v256_v27  ;;  %v283_v30 = vpack.c.bf16 %v1240_v23, %v281_v29 }
  0x1e   : > { %285 = vst [vmem:[#allocation7 + $0x10] sm:$0xf] %v283_v30 }
  0x22   : > { %v289_v31 = vld [vmem:[#allocation7] sm:$0xf]  ;;  %v1331_v32 = vld [vmem:[#allocation7 + $0x4] sm:$0xf] }
  0x23   : > { %v1333_v33 = vld [vmem:[#allocation7 + $0x8] sm:$0xf]  ;;  %v293_v34 = vld [vmem:[#allocation7 + $0xc] sm:$0x1]  ;;  %v1054_v35 = vcombine.low %v289_v31, %v1331_v32  ;;  %v431_v37 = vld [vmem:[#allocation7] sm:$0xe] }
  0x24   : > { %v1058_v36 = vcombine.low %v1333_v33, %v1333_v33  ;;  %v498_v38 = vld [vmem:[#allocation7] sm:$0x8]  ;;  %v1339_v39 = vcombine.low %v1333_v33, %v293_v34  ;;  %v1062_v40 = vcombine.low %v431_v37, %v1331_v32  ;;  %v499_v41 = vld [vmem:[#allocation7 + $0xc] sm:$0x7]  ;;  %v711_v57 = vld [vmem:[#allocation7 + $0x4] sm:$0xc]  ;;  %v1075_v15 = vcombine.low %v1331_v32, %v1333_v33 }
  0x25   : > { %v1066_v42 = vcombine.low %v498_v38, %v1331_v32  ;;  %v1343_v43 = vld [vmem:[#allocation7 + $0xc] sm:$0xf]  ;;  %v308_v44 = vshrl.u32 %v1054_v35, 16  ;;  %v310_v45 = vshll.u32 %v1054_v35, 16  ;;  %1130 = vmatprep.mubr.msk.bf16.mxu1 %vm322_vm3, %v1054_v35  ;;  %v1067_v46 = vcombine.low %v1333_v33, %v499_v41  ;;  %v1357_v61 = vld [vmem:[#allocation7 + $0x8] sm:$0xf] }
  0x26   : > { %v1071_v48 = vcombine.low %v1333_v33, %v1343_v43  ;;  %v315_v49 = vshll.u32 %v1339_v39, 16  ;;  %v319_v50 = vshrl.u32 %v1339_v39, 16  ;;  %1131 = vmatmul.mubr.msk.bf16.vlgmr.msra.gmra.mrb[0].mxu1 %vm322_vm3, %v1058_v36  ;;  %v438_v51 = vrot.slane %v1062_v40, 1  ;;  %v713_v3 = vld [vmem:[#allocation7 + $0xc] sm:$0xf]  ;;  %v1079_v33 = vld [vmem:[%s1411_s0 + $0x30] sm:$0xff] }
  0x27   : > { %v439_v52 = vrot.slane %v1339_v39, 1  ;;  %v312_v53 = vrot.slane %v310_v45, 1  ;;  %1141 = vmatpush3.bf16.msra.mxu1 %v1310_v7  ;;  %v509_v54 = vrot.slane %v1066_v42, 3  ;;  %v510_v55 = vrot.slane %v1067_v46, 3  ;;  %v788_v4 = vld [vmem:[#allocation7 + $0x10] sm:$0x7] }
  0x28   : > { %v577_v56 = vshrl.u32 %v1066_v42, 16  ;;  %v317_v58 = vrot.slane %v315_v49, 1  ;;  %1152 = vmatprep.subr.bf16.mxu1 %v1074_v47  ;;  %v580_v59 = vshll.u32 %v1066_v42, 16  ;;  %v585_v60 = vshrl.u32 %v1071_v48, 16  ;;  %v869_v37 = vld [vmem:[#allocation7 + $0x4] sm:$0x8] }
  0x29   : > { %v313_v62 = vor.u32 %v312_v53, %v308_v44  ;;  %v511_v63 = vsel %vm508_vm5, %v509_v54, %v510_v55  ;;  %v588_v0 = vshll.u32 %v1071_v48, 16  ;;  %v440_v8 = vsel %vm437_vm4, %v438_v51, %v439_v52  ;;  %v1088_v40 = vld [vmem:[%s1411_s0 + $0x40] sm:$0xff] }
  0x2a   : > { %v321_v5 = vor.u32 %v319_v50, %v317_v58  ;;  %1142 = vmatprep.mubr.msk.bf16.mxu1 %vm322_vm3, %v511_v63  ;;  %v579_v7 = vrot.slane %v577_v56, 3  ;;  %v582_v9 = vrot.slane %v580_v59, 4  ;;  %v587_v11 = vrot.slane %v585_v60, 3 }
  0x2b   : > { %v318_v10 = vsel %vm306_vm2, %v313_v62, %v317_v58  ;;  %v590_v12 = vrot.slane %v588_v0, 4  ;;  %v1080_v13 = vcombine.low %v711_v57, %v1357_v61  ;;  %v1085_v16 = vcombine.low %v713_v3, %v788_v4 }
  0x2c   : > { %1124 = vmatprep.mubr.msk.bf16.mxu0 %vm322_vm3, %v318_v10  ;;  %v583_v22 = vor.u32 %v582_v9, %v579_v7  ;;  %v1076_v31 = vcombine.low %v1343_v43, %v1343_v43  ;;  %v1089_v39 = vcombine.low %v869_v37, %v1357_v61 }
  0x2d   : > { %1125 = vmatmul.mubr.msk.bf16.vlgmr.msra.gmra.mrb[0].mxu0 %vm322_vm3, %v321_v5  ;;  %v796_v17 = vshrl.u32 %v1080_v13, 16  ;;  %v799_v19 = vshll.u32 %v1080_v13, 16  ;;  %v804_v20 = vshrl.u32 %v1085_v16, 16  ;;  %v807_v21 = vshll.u32 %v1085_v16, 16 }
  0x2e   : > { %1135 = vmatpush3.bf16.msra.mxu0 %v1305_v6  ;;  %1136 = vmatprep.mubr.msk.bf16.mxu0 %vm322_vm3, %v440_v8  ;;  %v591_v23 = vor.u32 %v590_v12, %v587_v11  ;;  %v714_v6 = vld [vmem:[#allocation7 + $0x10] sm:$0x3]  ;;  %v728_v35 = vrot.slane %v1080_v13, 2  ;;  %v875_v41 = vrot.slane %v1089_v39, 3  ;;  %v876_v42 = vrot.slane %v1085_v16, 3 }
  0x2f   : > { %1146 = vmatprep.subr.bf16.mxu0 %v1070_v14  ;;  %1143 = vmatmul.mubr.msk.bf16.vlgmr.msra.gmra.mrb[4].mxu1 %vm322_vm3, %v510_v55  ;;  %v798_v24 = vrot.slane %v796_v17, 2  ;;  %v801_v25 = vrot.slane %v799_v19, 3  ;;  %v806_v26 = vrot.slane %v804_v20, 2  ;;  %v809_v27 = vrot.slane %v807_v21, 3 }
  0x30   : > { %1153 = vmatpush3.bf16.msra.mxu1 %v1074_v47  ;;  %1154 = vmatprep.mubr.msk.bf16.mxu1 %vm322_vm3, %v1075_v15  ;;  %v592_v30 = vsel %vm575_vm6, %v583_v22, %v591_v23  ;;  %v1081_v32 = vcombine.low %v713_v3, %v714_v6  ;;  %v877_v43 = vsel %vm508_vm5, %v875_v41, %v876_v42 }
  0x31   : > { %1164 = vmatprep.subr.bf16.mxu1 %v1084_v18  ;;  %v802_v28 = vor.u32 %v801_v25, %v798_v24  ;;  %v810_v29 = vor.u32 %v809_v27, %v806_v26 }
  0x32   : > { %v729_v36 = vrot.slane %v1081_v32, 2 }
  0x33   : > { %v811_v34 = vsel %vm794_vm7, %v802_v28, %v810_v29 }
  0x34   : > { %v730_v38 = vsel %vm727_vm8, %v728_v35, %v729_v36 }
  0x35   : > { %1137 = vmatmul.mubr.msk.bf16.vlgmr.msra.gmra.mrb[4].mxu0 %vm322_vm3, %v439_v52 }
  0x36   : > { %1147 = vmatpush3.bf16.msra.mxu0 %v1070_v14  ;;  %1148 = vmatprep.mubr.msk.bf16.mxu0 %vm322_vm3, %v592_v30 }
  0x37   : > { %1158 = vmatprep.subr.bf16.mxu0 %v1079_v33  ;;  %1155 = vmatmul.mubr.msk.bf16.vlgmr.msra.gmra.mrb[8].mxu1 %vm322_vm3, %v1076_v31 }
  0x38   : > { %1165 = vmatpush3.bf16.msra.mxu1 %v1084_v18  ;;  %1166 = vmatprep.mubr.msk.bf16.mxu1 %vm322_vm3, %v811_v34 }
  0x3d   : > { %1149 = vmatmul.mubr.msk.bf16.vlgmr.msra.gmra.mrb[8].mxu0 %vm322_vm3, %v591_v23 }
  0x3e   : > { %1159 = vmatpush3.bf16.msra.mxu0 %v1079_v33  ;;  %1160 = vmatprep.mubr.msk.bf16.mxu0 %vm322_vm3, %v730_v38 }
  0x3f   : > { %1170 = vmatprep.subr.bf16.mxu0 %v1088_v40  ;;  %1167 = vmatmul.mubr.msk.bf16.vlgmr.msra.gmra.mrb[12].mxu1 %vm322_vm3, %v810_v29 }
  0x45   : > { %1161 = vmatmul.mubr.msk.bf16.vlgmr.msra.gmra.mrb[12].mxu0 %vm322_vm3, %v729_v36  ;;  %v1092_v36 = vld [vmem:[#allocation8] ss:$0 sm:$0xff] }
  0x46   : > { %1171 = vmatpush3.bf16.msra.mxu0 %v1088_v40  ;;  %1172 = vmatprep.mubr.msk.bf16.mxu0 %vm322_vm3, %v877_v43 }
  0x4d   : > { %1173 = vmatmul.mubr.msk.bf16.vlgmr.msra.gmra.mrb[16].mxu0 %vm322_vm3, %v876_v42 }
  0xf9   : > { %v1132_v44 = vpop.f32.mrb[0].mxu1 }
  0xfa   : > { %v417_v45 = vpop.f32.mrb[1].mxu1 }
  0xfb   : > { %v1133_v46 = vpop.f32.mrb[2].mxu1 }
  0xfc   : > { %v420_v47 = vpop.f32.mrb[3].mxu1 }
 0x100   : > { %v1126_v48 = vpop.f32.mrb[0].mxu0 }
 0x101   : > { %v426_v49 = vadd.f32 %v1132_v44, %v1126_v48  ;;  %v363_v50 = vpop.f32.mrb[1].mxu0 }
 0x102   : > { %v418_v51 = vadd.f32 %v417_v45, %v363_v50  ;;  %v1127_v52 = vpop.f32.mrb[2].mxu0  ;;  %v1144_v53 = vpop.f32.mrb[4].mxu1 }
 0x103   : > { %v366_v54 = vpop.f32.mrb[3].mxu0  ;;  %v552_v55 = vpop.f32.mrb[5].mxu1 }
 0x104   : > { %v421_v56 = vadd.f32 %v420_v47, %v366_v54  ;;  %v1145_v57 = vpop.f32.mrb[6].mxu1 }
 0x105   : > { %v555_v58 = vpop.f32.mrb[7].mxu1 }
 0x108   : > { %v1138_v59 = vpop.f32.mrb[4].mxu0 }
 0x109   : > { %v497_v60 = vadd.f32 %v1138_v59, %v426_v49  ;;  %v481_v61 = vpop.f32.mrb[5].mxu0 }
 0x10a   : > { %v495_v62 = vadd.f32 %v481_v61, %v418_v51  ;;  %v1139_v63 = vpop.f32.mrb[6].mxu0  ;;  %v1156_v0 = vpop.f32.mrb[8].mxu1 }
 0x10b   : > { %v568_v3 = vadd.f32 %v1144_v53, %v497_v60  ;;  %v484_v4 = vpop.f32.mrb[7].mxu0  ;;  %v694_v5 = vpop.f32.mrb[9].mxu1 }
 0x10c   : > { %v496_v8 = vadd.f32 %v484_v4, %v421_v56  ;;  %v566_v7 = vadd.f32 %v552_v55, %v495_v62  ;;  %v1157_v9 = vpop.f32.mrb[10].mxu1 }
 0x10d   : > { %v697_v10 = vpop.f32.mrb[11].mxu1 }
 0x10e   : > { %v567_v11 = vadd.f32 %v555_v58, %v496_v8 }
 0x110   : > { %v1150_v12 = vpop.f32.mrb[8].mxu0 }
 0x111   : > { %v649_v13 = vadd.f32 %v1150_v12, %v568_v3  ;;  %v633_v14 = vpop.f32.mrb[9].mxu0 }
 0x112   : > { %v647_v15 = vadd.f32 %v633_v14, %v566_v7  ;;  %v1151_v16 = vpop.f32.mrb[10].mxu0  ;;  %v1168_v17 = vpop.f32.mrb[12].mxu1 }
 0x113   : > { %v710_v18 = vadd.f32 %v1156_v0, %v649_v13  ;;  %v636_v19 = vpop.f32.mrb[11].mxu0  ;;  %v852_v20 = vpop.f32.mrb[13].mxu1 }
 0x114   : > { %v648_v21 = vadd.f32 %v636_v19, %v567_v11  ;;  %v708_v22 = vadd.f32 %v694_v5, %v647_v15  ;;  %v1169_v23 = vpop.f32.mrb[14].mxu1 }
 0x115   : > { %v855_v24 = vpop.f32.mrb[15].mxu1 }
 0x116   : > { %v709_v6 = vadd.f32 %v697_v10, %v648_v21 }
 0x118   : > { %v1162_v25 = vpop.f32.mrb[12].mxu0 }
 0x119   : > { %v787_v26 = vadd.f32 %v1162_v25, %v710_v18  ;;  %v771_v27 = vpop.f32.mrb[13].mxu0 }
 0x11a   : > { %v785_v28 = vadd.f32 %v771_v27, %v708_v22  ;;  %v1163_v29 = vpop.f32.mrb[14].mxu0 }
 0x11b   : > { %v868_v30 = vadd.f32 %v1168_v17, %v787_v26  ;;  %v774_v31 = vpop.f32.mrb[15].mxu0 }
 0x11c   : > { %v786_v32 = vadd.f32 %v774_v31, %v709_v6  ;;  %v866_v33 = vadd.f32 %v852_v20, %v785_v28 }
 0x11e   : > { %v867_v34 = vadd.f32 %v855_v24, %v786_v32 }
 0x120   : > { %v1174_v35 = vpop.f32.mrb[16].mxu0 }
 0x121   : > { %v934_v37 = vadd.f32 %v1174_v35, %v868_v30  ;;  %v918_v38 = vpop.f32.mrb[17].mxu0 }
 0x122   : > { %v932_v39 = vadd.f32 %v918_v38, %v866_v33  ;;  %v1175_v40 = vpop.f32.mrb[18].mxu0 }
 0x123   : > { %v944_v41 = vadd.f32 %v1092_v36, %v934_v37  ;;  %v921_v42 = vpop.f32.mrb[19].mxu0 }
 0x124   : > { %v942_v43 = vadd.f32 %v1092_v36, %v932_v39  ;;  %v933_v44 = vadd.f32 %v921_v42, %v867_v34 }
 0x125   : > { %947 = vst [vmem:[%s188_s26 + $0x10] sm:$0xff] %v944_v41 }
 0x126   : > { %945 = vst [vmem:[%s188_s26] sm:$0xff] %v942_v43  ;;  %v943_v45 = vadd.f32 %v1092_v36, %v933_v44 }
 0x128   : > { %946 = vst [vmem:[%s188_s26 + $0x8] sm:$0xff] %v943_v45 }
 0x129 PF: > { %s20_s21 = sadd.s32 1, %s1238_s21   ;;  %s1416_s19 = smov %s1234_s20 }
 0x12a   : > { %p17_p5 = scmp.ge.s32.totalorder %s20_s21, 4   ;;  %s1417_s20 = smov %s1419_s2 }
 0x12c   :  { %19 = sbr.rel (!%p17_p5) target bundleno = 3 (0x3), region = 77 }

</bundles_post_ra>
